<compile_context>
chip_gen: v7x
topology: tpu7x:2x2x1
jax: 0.10.0
libtpu: 0.0.40
codegen_flags: <defaults>
</compile_context>

<pallas_src>
import jax
import jax.numpy as jnp
from jax import lax
from jax.experimental import pallas as pl

# ---------------- config (small, consistent with the module) ----------------
HIDDEN = 64
NUM_HEADS = 4
NUM_KV_HEADS = 2
HEAD_DIM = HIDDEN // NUM_HEADS            # 16
HALF_DIM = HEAD_DIM // 2                  # 8
Q_SIZE = NUM_HEADS * HEAD_DIM             # 64
KV_SIZE = NUM_KV_HEADS * HEAD_DIM         # 32
KV_REP = NUM_HEADS // NUM_KV_HEADS        # GQA repeat factor (2)
ROPE_THETA = 10000.0
RMS_EPS = 1e-6
NUM_EXPERTS = 4
TOP_K = 2
MOE_INTER = 32
SHARED_INTER = 32
SEQ = 8
ATTN_SCALE = HEAD_DIM ** -0.5

F32 = jnp.float32
BF16 = jnp.bfloat16

# Lane-dense fused QKV(+rotate-half) projection column layout (width 256):
#   [Q_OFF : Q_OFF+64)     q
#   [K_OFF : K_OFF+32)     k
#   [V_OFF : V_OFF+32)     v
#   [QP_OFF: QP_OFF+64)    q @ P   (within-head half-swap of q)
#   [KP_OFF: KP_OFF+32)    k @ P
#   rest                   zero pad
Q_OFF = 0
K_OFF = Q_SIZE                            # 64
V_OFF = Q_SIZE + KV_SIZE                  # 96
QP_OFF = Q_SIZE + 2 * KV_SIZE             # 128
KP_OFF = QP_OFF + Q_SIZE                  # 192
QKVR_COLS = 256

# Lane-dense fused post-attn projection layout (width 128):
#   [0 : 2*SHARED_INTER)              shared-expert gate_up
#   [ROUTER_COL : ROUTER_COL+E)       router logits
#   [GATE_COL : GATE_COL+1)           shared-expert sigmoid gate
ROUTER_COL = 2 * SHARED_INTER             # 64
GATE_COL = 72                             # 8-aligned offset
FUSED_COLS = 128


# --------------------------- fused decoder-layer body ------------------------
def _layer_body(x, cos_q_ref, sin_q_ref, cos_k_ref, sin_k_ref,
                ln1_ref, ln2_ref,
                w_qkvr_ref, b_qkvr_ref, w_o_ref,
                fused_w_ref, shared_wd_ref,
                expert_wgu_ref, expert_wd_ref,
                out_ref):
    T = x.shape[0]

    # ---- 1) input RMSNorm (residual add already fused into x by the caller) --
    resid1 = x
    var1 = jnp.mean(x * x, axis=-1, keepdims=True)
    x1 = (x * lax.rsqrt(var1 + RMS_EPS)) * ln1_ref[...]
    x1_bf = x1.astype(BF16)

    # ---- 2) fused QKV + rotate-half projection (one lane-dense matmul) -------
    qkvr = jnp.dot(x1_bf, w_qkvr_ref[...].astype(BF16),
                   preferred_element_type=F32) + b_qkvr_ref[...]
    q = qkvr[:, Q_OFF:Q_OFF + Q_SIZE]
    k = qkvr[:, K_OFF:K_OFF + KV_SIZE]
    v = qkvr[:, V_OFF:V_OFF + KV_SIZE]
    qh = qkvr[:, QP_OFF:QP_OFF + Q_SIZE]      # half-swapped q
    kh = qkvr[:, KP_OFF:KP_OFF + KV_SIZE]     # half-swapped k

    # ---- 3) full-width neox RoPE: rot(x) = x*cos + swap_half(x)*sin_signed ---
    # (sin_signed carries the [-sin, +sin] half pattern, precomputed host-side)
    q_rot = (q * cos_q_ref[...] + qh * sin_q_ref[...]).astype(BF16)
    k_rot = (k * cos_k_ref[...] + kh * sin_k_ref[...]).astype(BF16)
    v_bf = v.astype(BF16)

    # ---- 4) causal GQA attention (per-head unroll) + ONE folded o_proj -------
    row = lax.broadcasted_iota(jnp.int32, (T, T), 0)
    col = lax.broadcasted_iota(jnp.int32, (T, T), 1)
    causal = col <= row
    dn = (((1,), (1,)), ((), ()))             # contract dim 1 of both (q @ k^T)

    ctx_heads = []
    for h in range(NUM_HEADS):                # static unroll (4 heads)
        qo = h * HEAD_DIM
        ko = (h // KV_REP) * HEAD_DIM         # shared KV head (GQA)
        s = lax.dot_general(q_rot[:, qo:qo + HEAD_DIM],
                            k_rot[:, ko:ko + HEAD_DIM],
                            dn, preferred_element_type=F32) * ATTN_SCALE
        s = jnp.where(causal, s, -1e30)       # scores / mask stay in f32
        m = jnp.max(s, axis=-1, keepdims=True)
        p = jnp.exp(s - m)
        p = p * pl.reciprocal(jnp.sum(p, axis=-1, keepdims=True), approx=True)
        ctx_heads.append(jnp.dot(p.astype(BF16), v_bf[:, ko:ko + HEAD_DIM],
                                 preferred_element_type=F32))
    ctx = jnp.concatenate(ctx_heads, axis=-1)                 # (T, 64)
    attn_out = jnp.dot(ctx.astype(BF16), w_o_ref[...].astype(BF16),
                       preferred_element_type=F32)

    # ---- 5) post-attention residual add + RMSNorm ----------------------------
    resid2 = attn_out + resid1
    var2 = jnp.mean(resid2 * resid2, axis=-1, keepdims=True)
    x2 = (resid2 * lax.rsqrt(var2 + RMS_EPS)) * ln2_ref[...]
    x2_bf = x2.astype(BF16)

    # ---- 6) lane-dense fused projection: shared gate_up | router | gate ------
    fused = jnp.dot(x2_bf, fused_w_ref[...].astype(BF16),
                    preferred_element_type=F32)               # (T, 128)

    # shared expert (SiluAndMul + down proj), sigmoid-gated
    g = fused[:, :SHARED_INTER]
    u = fused[:, SHARED_INTER:2 * SHARED_INTER]
    act = (g * jax.nn.sigmoid(g)) * u
    shared = jnp.dot(act.astype(BF16), shared_wd_ref[...].astype(BF16),
                     preferred_element_type=F32)              # (T, H)
    shared = jax.nn.sigmoid(fused[:, GATE_COL:GATE_COL + 1]) * shared

    # ---- 7) router softmax + exact top-2 (iota tie-break) + renormalize ------
    logits = fused[:, ROUTER_COL:ROUTER_COL + NUM_EXPERTS]    # (T, E)
    lmax = jnp.max(logits, axis=-1, keepdims=True)
    el = jnp.exp(logits - lmax)
    probs = el * pl.reciprocal(jnp.sum(el, axis=-1, keepdims=True), approx=True)

    ecol = lax.broadcasted_iota(jnp.int32, (T, NUM_EXPERTS), 1)
    big = jnp.int32(NUM_EXPERTS)
    p1 = jnp.max(probs, axis=-1, keepdims=True)
    i1 = jnp.min(jnp.where(probs == p1, ecol, big), axis=-1, keepdims=True)
    one1 = ecol == i1
    masked = jnp.where(one1, -1.0, probs)                     # probs >= 0
    p2 = jnp.max(masked, axis=-1, keepdims=True)
    i2 = jnp.min(jnp.where(masked == p2, ecol, big), axis=-1, keepdims=True)
    sel = jnp.where(one1 | (ecol == i2), probs, 0.0)          # exactly TOP_K=2
    routing = sel * pl.reciprocal(jnp.sum(sel, axis=-1, keepdims=True),
                                  approx=True)                # (T, E)

    # ---- 8) dense MoE experts (E=4, statically unrolled, in-register acc) ----
    acc = shared
    for e in range(NUM_EXPERTS):
        gu = jnp.dot(x2_bf, expert_wgu_ref[e].astype(BF16),
                     preferred_element_type=F32)              # (T, 2I)
        ge = gu[:, :MOE_INTER]
        ue = gu[:, MOE_INTER:]
        he = (ge * jax.nn.sigmoid(ge)) * ue
        oe = jnp.dot(he.astype(BF16), expert_wd_ref[e].astype(BF16),
                     preferred_element_type=F32)              # (T, H)
        acc = acc + routing[:, e:e + 1] * oe

    # TODO(synk): tensor-parallel all-reduce (tp_size > 1) has no single-chip equivalent.

    # ---- 9) single lane-dense (T, 128) store: [layer_out | residual_out] -----
    out_ref[...] = jnp.concatenate([acc, resid2], axis=-1)


def _kernel_first(hidden_ref, *rest):
    # residual=None path of Qwen2MoeDecoderLayer: residual := hidden
    _layer_body(hidden_ref[...], *rest)


def _kernel_rest(hidden_ref, resid_ref, *rest):
    # fused residual-add path
    _layer_body(hidden_ref[...] + resid_ref[...], *rest)


# ------------------------------ host-side glue --------------------------------
def _rope_tables(positions):
    """Full-width neox cos / signed-sin tables for Q (T, 64) and K (T, 32)."""
    inv_freq = 1.0 / (ROPE_THETA ** (
        jnp.arange(0, HALF_DIM, dtype=F32) * 2.0 / HEAD_DIM))
    freqs = positions.astype(F32)[:, None] * inv_freq[None, :]        # (T, 8)
    cos = jnp.cos(freqs)
    sin = jnp.sin(freqs)
    # neox: o1 = x1*cos - x2*sin ; o2 = x2*cos + x1*sin
    cos_head = jnp.concatenate([cos, cos], axis=-1)                   # (T, 16)
    sin_head = jnp.concatenate([-sin, sin], axis=-1)                  # sign folded
    cos_q = jnp.tile(cos_head, (1, NUM_HEADS))                        # (T, 64)
    sin_q = jnp.tile(sin_head, (1, NUM_HEADS))
    cos_k = jnp.tile(cos_head, (1, NUM_KV_HEADS))                     # (T, 32)
    sin_k = jnp.tile(sin_head, (1, NUM_KV_HEADS))
    return cos_q, sin_q, cos_k, sin_k


def _pallas_layer(hidden, residual, cos_q, sin_q, cos_k, sin_k, params):
    T = hidden.shape[0]
    args = (cos_q, sin_q, cos_k, sin_k,
            params["ln1_w"], params["ln2_w"],
            params["w_qkvr"], params["b_qkvr"], params["w_o"],
            params["fused_w"], params["shared_wd"],
            params["expert_wgu"], params["expert_wd"])
    out_shape = jax.ShapeDtypeStruct((T, 2 * HIDDEN), F32)
    if residual is None:
        packed = pl.pallas_call(_kernel_first, out_shape=out_shape)(hidden, *args)
    else:
        packed = pl.pallas_call(_kernel_rest, out_shape=out_shape)(
            hidden, residual, *args)
    return packed[:, :HIDDEN], packed[:, HIDDEN:]


@jax.jit
def _layer_first(params, positions, hidden):
    return _pallas_layer(hidden, None, *_rope_tables(positions), params)


@jax.jit
def _layer_rest(params, positions, hidden, residual):
    return _pallas_layer(hidden, residual, *_rope_tables(positions), params)


def decoder_layer_forward(params, positions, hidden_states, residual=None):
    if residual is None:
        return _layer_first(params, positions, hidden_states)
    return _layer_rest(params, positions, hidden_states, residual)


# ------------------------------- Param init -----------------------------------
def init_params(key):
    ks = jax.random.split(key, 10)

    def nrm(k, shape, scale=0.05):
        return jax.random.normal(k, shape, F32) * scale

    return dict(
        ln1_w=jnp.ones((1, HIDDEN), F32),
        ln2_w=jnp.ones((1, HIDDEN), F32),
        w_qkv=nrm(ks[0], (HIDDEN, Q_SIZE + 2 * KV_SIZE)),
        b_qkv=nrm(ks[1], (1, Q_SIZE + 2 * KV_SIZE)),
        w_o=nrm(ks[2], (Q_SIZE, HIDDEN)),
        w_router=nrm(ks[3], (HIDDEN, NUM_EXPERTS)),
        w_shared_gate=nrm(ks[4], (HIDDEN, 1)),
        shared_wgu=nrm(ks[5], (HIDDEN, 2 * SHARED_INTER)),
        shared_wd=nrm(ks[6], (SHARED_INTER, HIDDEN)),
        expert_wgu=nrm(ks[7], (NUM_EXPERTS, HIDDEN, 2 * MOE_INTER)),
        expert_wd=nrm(ks[8], (NUM_EXPERTS, MOE_INTER, HIDDEN)),
    )


def _swap_half_perm(width):
    """Permutation P (width, width): column j of (x @ P) is the within-head
    rotate-half source element of feature j (sign handled by sin table)."""
    idx = jnp.arange(width)
    head = idx // HEAD_DIM
    d = idx % HEAD_DIM
    dst = head * HEAD_DIM + jnp.where(d < HALF_DIM, d + HALF_DIM, d - HALF_DIM)
    return jnp.zeros((width, width), F32).at[idx, dst].set(1.0)


def prepare_params(p):
    """One-time host-side packing:
       * w_qkvr/b_qkvr: lane-dense (H, 256) QKV projection producing
         [q | k | v | q@P | k@P | 0-pad] so in-kernel RoPE is pure full-width VPU.
       * fused_w: lane-dense (H, 128) [shared gate_up | router logits | shared gate].
    (At real model sizes these weights should additionally be stored/DMAed in bf16.)"""
    pq = _swap_half_perm(Q_SIZE)
    pk = _swap_half_perm(KV_SIZE)
    wq = p["w_qkv"][:, :Q_SIZE]
    wk = p["w_qkv"][:, Q_SIZE:Q_SIZE + KV_SIZE]
    wv = p["w_qkv"][:, Q_SIZE + KV_SIZE:]
    bq = p["b_qkv"][:, :Q_SIZE]
    bk = p["b_qkv"][:, Q_SIZE:Q_SIZE + KV_SIZE]
    bv = p["b_qkv"][:, Q_SIZE + KV_SIZE:]
    pad_cols = QKVR_COLS - (2 * Q_SIZE + 3 * KV_SIZE)
    w_qkvr = jnp.concatenate(
        [wq, wk, wv, wq @ pq, wk @ pk, jnp.zeros((HIDDEN, pad_cols), F32)], axis=1)
    b_qkvr = jnp.concatenate(
        [bq, bk, bv, bq @ pq, bk @ pk, jnp.zeros((1, pad_cols), F32)], axis=1)

    fused_w = jnp.zeros((HIDDEN, FUSED_COLS), F32)
    fused_w = fused_w.at[:, :2 * SHARED_INTER].set(p["shared_wgu"])
    fused_w = fused_w.at[:, ROUTER_COL:ROUTER_COL + NUM_EXPERTS].set(p["w_router"])
    fused_w = fused_w.at[:, GATE_COL:GATE_COL + 1].set(p["w_shared_gate"])

    return dict(
        ln1_w=p["ln1_w"], ln2_w=p["ln2_w"],
        w_qkvr=w_qkvr, b_qkvr=b_qkvr, w_o=p["w_o"],
        fused_w=fused_w, shared_wd=p["shared_wd"],
        expert_wgu=p["expert_wgu"], expert_wd=p["expert_wd"],
    )


if __name__ == "__main__":
    key = jax.random.PRNGKey(0)
    pkey, xkey = jax.random.split(key)
    params = prepare_params(init_params(pkey))

    positions = jnp.arange(SEQ, dtype=jnp.int32)
    hidden_states = jax.random.normal(xkey, (SEQ, HIDDEN), F32)

    # layer 0 (residual=None path) and layer 1 (fused residual-add path),
    # mirroring how Qwen2MoeModel stacks decoder layers.
    h, residual = decoder_layer_forward(params, positions, hidden_states,
                                        residual=None)
    h, residual = decoder_layer_forward(params, positions, h, residual=residual)
    jax.block_until_ready((h, residual))

    assert h.shape == (SEQ, HIDDEN) and residual.shape == (SEQ, HIDDEN)
    assert bool(jnp.all(jnp.isfinite(h))) and bool(jnp.all(jnp.isfinite(residual)))
    print("KERNEL_OK")
</pallas_src>

<mosaic_0001>
module attributes {stable_mosaic.version = 11 : i64} {
  func.func @_kernel_first(%arg0: memref<8x64xf32, #tpu.memory_space<vmem>>, %arg1: memref<8x64xf32, #tpu.memory_space<vmem>>, %arg2: memref<8x64xf32, #tpu.memory_space<vmem>>, %arg3: memref<8x32xf32, #tpu.memory_space<vmem>>, %arg4: memref<8x32xf32, #tpu.memory_space<vmem>>, %arg5: memref<1x64xf32, #tpu.memory_space<vmem>>, %arg6: memref<1x64xf32, #tpu.memory_space<vmem>>, %arg7: memref<64x256xf32, #tpu.memory_space<vmem>>, %arg8: memref<1x256xf32, #tpu.memory_space<vmem>>, %arg9: memref<64x64xf32, #tpu.memory_space<vmem>>, %arg10: memref<64x128xf32, #tpu.memory_space<vmem>>, %arg11: memref<32x64xf32, #tpu.memory_space<vmem>>, %arg12: memref<4x64x64xf32, #tpu.memory_space<vmem>>, %arg13: memref<4x32x64xf32, #tpu.memory_space<vmem>>, %arg14: memref<8x128xf32, #tpu.memory_space<vmem>>) attributes {dimension_semantics = [], scalar_prefetch = 0 : i64, scratch_operands = 0 : i64, tpu.core_type = #tpu.core_type<tc>} {
    %c0 = arith.constant 0 : index
    %c0_0 = arith.constant 0 : index
    %0 = vector.load %arg0[%c0, %c0_0] : memref<8x64xf32, #tpu.memory_space<vmem>>, vector<8x64xf32>
    %1 = arith.mulf %0, %0 : vector<8x64xf32>
    %cst = arith.constant dense<0.000000e+00> : vector<8xf32>
    %2 = vector.multi_reduction <add>, %1, %cst [1] : vector<8x64xf32> to vector<8xf32>
    %3 = vector.shape_cast %2 : vector<8xf32> to vector<8x1xf32>
    %cst_1 = arith.constant 6.400000e+01 : f32
    %4 = vector.broadcast %cst_1 : f32 to vector<8x1xf32>
    %5 = arith.divf %3, %4 : vector<8x1xf32>
    %cst_2 = arith.constant 9.99999997E-7 : f32
    %6 = vector.broadcast %cst_2 : f32 to vector<8x1xf32>
    %7 = arith.addf %5, %6 : vector<8x1xf32>
    %8 = math.rsqrt %7 : vector<8x1xf32>
    %9 = vector.broadcast %8 : vector<8x1xf32> to vector<8x64xf32>
    %10 = arith.mulf %0, %9 : vector<8x64xf32>
    %c0_3 = arith.constant 0 : index
    %c0_4 = arith.constant 0 : index
    %11 = vector.load %arg5[%c0_3, %c0_4] : memref<1x64xf32, #tpu.memory_space<vmem>>, vector<1x64xf32>
    %12 = vector.broadcast %11 : vector<1x64xf32> to vector<8x64xf32>
    %13 = arith.mulf %10, %12 : vector<8x64xf32>
    %14 = arith.truncf %13 : vector<8x64xf32> to vector<8x64xbf16>
    %c0_5 = arith.constant 0 : index
    %c0_6 = arith.constant 0 : index
    %15 = vector.load %arg7[%c0_5, %c0_6] : memref<64x256xf32, #tpu.memory_space<vmem>>, vector<64x256xf32>
    %16 = arith.truncf %15 : vector<64x256xf32> to vector<64x256xbf16>
    %cst_7 = arith.constant dense<0.000000e+00> : vector<8x256xf32>
    %17 = tpu.matmul %14, %16, %cst_7 {dimension_numbers = #tpu.dot_dimension_numbers<[1], [0], [0], [1], [0, 0, 1, 1], [], []>} : vector<8x64xbf16>, vector<64x256xbf16>, vector<8x256xf32> -> vector<8x256xf32>
    %c0_8 = arith.constant 0 : index
    %c0_9 = arith.constant 0 : index
    %18 = vector.load %arg8[%c0_8, %c0_9] : memref<1x256xf32, #tpu.memory_space<vmem>>, vector<1x256xf32>
    %19 = vector.broadcast %18 : vector<1x256xf32> to vector<8x256xf32>
    %20 = arith.addf %17, %19 : vector<8x256xf32>
    %21 = vector.extract_strided_slice %20 {offsets = [0, 0], sizes = [8, 64], strides = [1, 1]} : vector<8x256xf32> to vector<8x64xf32>
    %22 = vector.extract_strided_slice %20 {offsets = [0, 64], sizes = [8, 32], strides = [1, 1]} : vector<8x256xf32> to vector<8x32xf32>
    %23 = vector.extract_strided_slice %20 {offsets = [0, 96], sizes = [8, 32], strides = [1, 1]} : vector<8x256xf32> to vector<8x32xf32>
    %24 = vector.extract_strided_slice %20 {offsets = [0, 128], sizes = [8, 64], strides = [1, 1]} : vector<8x256xf32> to vector<8x64xf32>
    %25 = vector.extract_strided_slice %20 {offsets = [0, 192], sizes = [8, 32], strides = [1, 1]} : vector<8x256xf32> to vector<8x32xf32>
    %c0_10 = arith.constant 0 : index
    %c0_11 = arith.constant 0 : index
    %26 = vector.load %arg1[%c0_10, %c0_11] : memref<8x64xf32, #tpu.memory_space<vmem>>, vector<8x64xf32>
    %27 = arith.mulf %21, %26 : vector<8x64xf32>
    %c0_12 = arith.constant 0 : index
    %c0_13 = arith.constant 0 : index
    %28 = vector.load %arg2[%c0_12, %c0_13] : memref<8x64xf32, #tpu.memory_space<vmem>>, vector<8x64xf32>
    %29 = arith.mulf %24, %28 : vector<8x64xf32>
    %30 = arith.addf %27, %29 : vector<8x64xf32>
    %31 = arith.truncf %30 : vector<8x64xf32> to vector<8x64xbf16>
    %c0_14 = arith.constant 0 : index
    %c0_15 = arith.constant 0 : index
    %32 = vector.load %arg3[%c0_14, %c0_15] : memref<8x32xf32, #tpu.memory_space<vmem>>, vector<8x32xf32>
    %33 = arith.mulf %22, %32 : vector<8x32xf32>
    %c0_16 = arith.constant 0 : index
    %c0_17 = arith.constant 0 : index
    %34 = vector.load %arg4[%c0_16, %c0_17] : memref<8x32xf32, #tpu.memory_space<vmem>>, vector<8x32xf32>
    %35 = arith.mulf %25, %34 : vector<8x32xf32>
    %36 = arith.addf %33, %35 : vector<8x32xf32>
    %37 = arith.truncf %36 : vector<8x32xf32> to vector<8x32xbf16>
    %38 = arith.truncf %23 : vector<8x32xf32> to vector<8x32xbf16>
    %39 = tpu.iota {dimensions = array<i32: 0>} : vector<8x8xi32>
    %40 = tpu.iota {dimensions = array<i32: 1>} : vector<8x8xi32>
    %41 = arith.cmpi sle, %40, %39 : vector<8x8xi32>
    %42 = vector.extract_strided_slice %31 {offsets = [0, 0], sizes = [8, 16], strides = [1, 1]} : vector<8x64xbf16> to vector<8x16xbf16>
    %43 = vector.extract_strided_slice %37 {offsets = [0, 0], sizes = [8, 16], strides = [1, 1]} : vector<8x32xbf16> to vector<8x16xbf16>
    %cst_18 = arith.constant dense<0.000000e+00> : vector<8x8xf32>
    %44 = tpu.matmul %42, %43, %cst_18 {dimension_numbers = #tpu.dot_dimension_numbers<[1], [1], [0], [0], [0, 0, 1, 0], [], []>} : vector<8x16xbf16>, vector<8x16xbf16>, vector<8x8xf32> -> vector<8x8xf32>
    %cst_19 = arith.constant 2.500000e-01 : f32
    %45 = vector.broadcast %cst_19 : f32 to vector<8x8xf32>
    %46 = arith.mulf %44, %45 : vector<8x8xf32>
    %cst_20 = arith.constant -1.000000e+30 : f32
    %47 = vector.broadcast %cst_20 : f32 to vector<8x8xf32>
    %48 = arith.select %41, %46, %47 : vector<8x8xi1>, vector<8x8xf32>
    %cst_21 = arith.constant dense<0xFF800000> : vector<8xf32>
    %49 = vector.multi_reduction <maximumf>, %48, %cst_21 [1] : vector<8x8xf32> to vector<8xf32>
    %50 = vector.shape_cast %49 : vector<8xf32> to vector<8x1xf32>
    %51 = vector.broadcast %50 : vector<8x1xf32> to vector<8x8xf32>
    %52 = arith.subf %48, %51 : vector<8x8xf32>
    %53 = math.exp %52 : vector<8x8xf32>
    %cst_22 = arith.constant dense<0.000000e+00> : vector<8xf32>
    %54 = vector.multi_reduction <add>, %53, %cst_22 [1] : vector<8x8xf32> to vector<8xf32>
    %55 = vector.shape_cast %54 : vector<8xf32> to vector<8x1xf32>
    %56 = tpu.reciprocal %55 {approx = true} : vector<8x1xf32> -> vector<8x1xf32>
    %57 = vector.broadcast %56 : vector<8x1xf32> to vector<8x8xf32>
    %58 = arith.mulf %53, %57 : vector<8x8xf32>
    %59 = arith.truncf %58 : vector<8x8xf32> to vector<8x8xbf16>
    %60 = vector.extract_strided_slice %38 {offsets = [0, 0], sizes = [8, 16], strides = [1, 1]} : vector<8x32xbf16> to vector<8x16xbf16>
    %cst_23 = arith.constant dense<0.000000e+00> : vector<8x16xf32>
    %61 = tpu.matmul %59, %60, %cst_23 {dimension_numbers = #tpu.dot_dimension_numbers<[1], [0], [0], [1], [0, 0, 1, 1], [], []>} : vector<8x8xbf16>, vector<8x16xbf16>, vector<8x16xf32> -> vector<8x16xf32>
    %62 = vector.extract_strided_slice %31 {offsets = [0, 16], sizes = [8, 16], strides = [1, 1]} : vector<8x64xbf16> to vector<8x16xbf16>
    %63 = vector.extract_strided_slice %37 {offsets = [0, 0], sizes = [8, 16], strides = [1, 1]} : vector<8x32xbf16> to vector<8x16xbf16>
    %cst_24 = arith.constant dense<0.000000e+00> : vector<8x8xf32>
    %64 = tpu.matmul %62, %63, %cst_24 {dimension_numbers = #tpu.dot_dimension_numbers<[1], [1], [0], [0], [0, 0, 1, 0], [], []>} : vector<8x16xbf16>, vector<8x16xbf16>, vector<8x8xf32> -> vector<8x8xf32>
    %cst_25 = arith.constant 2.500000e-01 : f32
    %65 = vector.broadcast %cst_25 : f32 to vector<8x8xf32>
    %66 = arith.mulf %64, %65 : vector<8x8xf32>
    %cst_26 = arith.constant -1.000000e+30 : f32
    %67 = vector.broadcast %cst_26 : f32 to vector<8x8xf32>
    %68 = arith.select %41, %66, %67 : vector<8x8xi1>, vector<8x8xf32>
    %cst_27 = arith.constant dense<0xFF800000> : vector<8xf32>
    %69 = vector.multi_reduction <maximumf>, %68, %cst_27 [1] : vector<8x8xf32> to vector<8xf32>
    %70 = vector.shape_cast %69 : vector<8xf32> to vector<8x1xf32>
    %71 = vector.broadcast %70 : vector<8x1xf32> to vector<8x8xf32>
    %72 = arith.subf %68, %71 : vector<8x8xf32>
    %73 = math.exp %72 : vector<8x8xf32>
    %cst_28 = arith.constant dense<0.000000e+00> : vector<8xf32>
    %74 = vector.multi_reduction <add>, %73, %cst_28 [1] : vector<8x8xf32> to vector<8xf32>
    %75 = vector.shape_cast %74 : vector<8xf32> to vector<8x1xf32>
    %76 = tpu.reciprocal %75 {approx = true} : vector<8x1xf32> -> vector<8x1xf32>
    %77 = vector.broadcast %76 : vector<8x1xf32> to vector<8x8xf32>
    %78 = arith.mulf %73, %77 : vector<8x8xf32>
    %79 = arith.truncf %78 : vector<8x8xf32> to vector<8x8xbf16>
    %80 = vector.extract_strided_slice %38 {offsets = [0, 0], sizes = [8, 16], strides = [1, 1]} : vector<8x32xbf16> to vector<8x16xbf16>
    %cst_29 = arith.constant dense<0.000000e+00> : vector<8x16xf32>
    %81 = tpu.matmul %79, %80, %cst_29 {dimension_numbers = #tpu.dot_dimension_numbers<[1], [0], [0], [1], [0, 0, 1, 1], [], []>} : vector<8x8xbf16>, vector<8x16xbf16>, vector<8x16xf32> -> vector<8x16xf32>
    %82 = vector.extract_strided_slice %31 {offsets = [0, 32], sizes = [8, 16], strides = [1, 1]} : vector<8x64xbf16> to vector<8x16xbf16>
    %83 = vector.extract_strided_slice %37 {offsets = [0, 16], sizes = [8, 16], strides = [1, 1]} : vector<8x32xbf16> to vector<8x16xbf16>
    %cst_30 = arith.constant dense<0.000000e+00> : vector<8x8xf32>
    %84 = tpu.matmul %82, %83, %cst_30 {dimension_numbers = #tpu.dot_dimension_numbers<[1], [1], [0], [0], [0, 0, 1, 0], [], []>} : vector<8x16xbf16>, vector<8x16xbf16>, vector<8x8xf32> -> vector<8x8xf32>
    %cst_31 = arith.constant 2.500000e-01 : f32
    %85 = vector.broadcast %cst_31 : f32 to vector<8x8xf32>
    %86 = arith.mulf %84, %85 : vector<8x8xf32>
    %cst_32 = arith.constant -1.000000e+30 : f32
    %87 = vector.broadcast %cst_32 : f32 to vector<8x8xf32>
    %88 = arith.select %41, %86, %87 : vector<8x8xi1>, vector<8x8xf32>
    %cst_33 = arith.constant dense<0xFF800000> : vector<8xf32>
    %89 = vector.multi_reduction <maximumf>, %88, %cst_33 [1] : vector<8x8xf32> to vector<8xf32>
    %90 = vector.shape_cast %89 : vector<8xf32> to vector<8x1xf32>
    %91 = vector.broadcast %90 : vector<8x1xf32> to vector<8x8xf32>
    %92 = arith.subf %88, %91 : vector<8x8xf32>
    %93 = math.exp %92 : vector<8x8xf32>
    %cst_34 = arith.constant dense<0.000000e+00> : vector<8xf32>
    %94 = vector.multi_reduction <add>, %93, %cst_34 [1] : vector<8x8xf32> to vector<8xf32>
    %95 = vector.shape_cast %94 : vector<8xf32> to vector<8x1xf32>
    %96 = tpu.reciprocal %95 {approx = true} : vector<8x1xf32> -> vector<8x1xf32>
    %97 = vector.broadcast %96 : vector<8x1xf32> to vector<8x8xf32>
    %98 = arith.mulf %93, %97 : vector<8x8xf32>
    %99 = arith.truncf %98 : vector<8x8xf32> to vector<8x8xbf16>
    %100 = vector.extract_strided_slice %38 {offsets = [0, 16], sizes = [8, 16], strides = [1, 1]} : vector<8x32xbf16> to vector<8x16xbf16>
    %cst_35 = arith.constant dense<0.000000e+00> : vector<8x16xf32>
    %101 = tpu.matmul %99, %100, %cst_35 {dimension_numbers = #tpu.dot_dimension_numbers<[1], [0], [0], [1], [0, 0, 1, 1], [], []>} : vector<8x8xbf16>, vector<8x16xbf16>, vector<8x16xf32> -> vector<8x16xf32>
    %102 = vector.extract_strided_slice %31 {offsets = [0, 48], sizes = [8, 16], strides = [1, 1]} : vector<8x64xbf16> to vector<8x16xbf16>
    %103 = vector.extract_strided_slice %37 {offsets = [0, 16], sizes = [8, 16], strides = [1, 1]} : vector<8x32xbf16> to vector<8x16xbf16>
    %cst_36 = arith.constant dense<0.000000e+00> : vector<8x8xf32>
    %104 = tpu.matmul %102, %103, %cst_36 {dimension_numbers = #tpu.dot_dimension_numbers<[1], [1], [0], [0], [0, 0, 1, 0], [], []>} : vector<8x16xbf16>, vector<8x16xbf16>, vector<8x8xf32> -> vector<8x8xf32>
    %cst_37 = arith.constant 2.500000e-01 : f32
    %105 = vector.broadcast %cst_37 : f32 to vector<8x8xf32>
    %106 = arith.mulf %104, %105 : vector<8x8xf32>
    %cst_38 = arith.constant -1.000000e+30 : f32
    %107 = vector.broadcast %cst_38 : f32 to vector<8x8xf32>
    %108 = arith.select %41, %106, %107 : vector<8x8xi1>, vector<8x8xf32>
    %cst_39 = arith.constant dense<0xFF800000> : vector<8xf32>
    %109 = vector.multi_reduction <maximumf>, %108, %cst_39 [1] : vector<8x8xf32> to vector<8xf32>
    %110 = vector.shape_cast %109 : vector<8xf32> to vector<8x1xf32>
    %111 = vector.broadcast %110 : vector<8x1xf32> to vector<8x8xf32>
    %112 = arith.subf %108, %111 : vector<8x8xf32>
    %113 = math.exp %112 : vector<8x8xf32>
    %cst_40 = arith.constant dense<0.000000e+00> : vector<8xf32>
    %114 = vector.multi_reduction <add>, %113, %cst_40 [1] : vector<8x8xf32> to vector<8xf32>
    %115 = vector.shape_cast %114 : vector<8xf32> to vector<8x1xf32>
    %116 = tpu.reciprocal %115 {approx = true} : vector<8x1xf32> -> vector<8x1xf32>
    %117 = vector.broadcast %116 : vector<8x1xf32> to vector<8x8xf32>
    %118 = arith.mulf %113, %117 : vector<8x8xf32>
    %119 = arith.truncf %118 : vector<8x8xf32> to vector<8x8xbf16>
    %120 = vector.extract_strided_slice %38 {offsets = [0, 16], sizes = [8, 16], strides = [1, 1]} : vector<8x32xbf16> to vector<8x16xbf16>
    %cst_41 = arith.constant dense<0.000000e+00> : vector<8x16xf32>
    %121 = tpu.matmul %119, %120, %cst_41 {dimension_numbers = #tpu.dot_dimension_numbers<[1], [0], [0], [1], [0, 0, 1, 1], [], []>} : vector<8x8xbf16>, vector<8x16xbf16>, vector<8x16xf32> -> vector<8x16xf32>
    %122 = tpu.concatenate %61, %81, %101, %121 in 1 : vector<8x16xf32>, vector<8x16xf32>, vector<8x16xf32>, vector<8x16xf32> -> vector<8x64xf32>
    %123 = arith.truncf %122 : vector<8x64xf32> to vector<8x64xbf16>
    %c0_42 = arith.constant 0 : index
    %c0_43 = arith.constant 0 : index
    %124 = vector.load %arg9[%c0_42, %c0_43] : memref<64x64xf32, #tpu.memory_space<vmem>>, vector<64x64xf32>
    %125 = arith.truncf %124 : vector<64x64xf32> to vector<64x64xbf16>
    %cst_44 = arith.constant dense<0.000000e+00> : vector<8x64xf32>
    %126 = tpu.matmul %123, %125, %cst_44 {dimension_numbers = #tpu.dot_dimension_numbers<[1], [0], [0], [1], [0, 0, 1, 1], [], []>} : vector<8x64xbf16>, vector<64x64xbf16>, vector<8x64xf32> -> vector<8x64xf32>
    %127 = arith.addf %126, %0 : vector<8x64xf32>
    %128 = arith.mulf %127, %127 : vector<8x64xf32>
    %cst_45 = arith.constant dense<0.000000e+00> : vector<8xf32>
    %129 = vector.multi_reduction <add>, %128, %cst_45 [1] : vector<8x64xf32> to vector<8xf32>
    %130 = vector.shape_cast %129 : vector<8xf32> to vector<8x1xf32>
    %cst_46 = arith.constant 6.400000e+01 : f32
    %131 = vector.broadcast %cst_46 : f32 to vector<8x1xf32>
    %132 = arith.divf %130, %131 : vector<8x1xf32>
    %cst_47 = arith.constant 9.99999997E-7 : f32
    %133 = vector.broadcast %cst_47 : f32 to vector<8x1xf32>
    %134 = arith.addf %132, %133 : vector<8x1xf32>
    %135 = math.rsqrt %134 : vector<8x1xf32>
    %136 = vector.broadcast %135 : vector<8x1xf32> to vector<8x64xf32>
    %137 = arith.mulf %127, %136 : vector<8x64xf32>
    %c0_48 = arith.constant 0 : index
    %c0_49 = arith.constant 0 : index
    %138 = vector.load %arg6[%c0_48, %c0_49] : memref<1x64xf32, #tpu.memory_space<vmem>>, vector<1x64xf32>
    %139 = vector.broadcast %138 : vector<1x64xf32> to vector<8x64xf32>
    %140 = arith.mulf %137, %139 : vector<8x64xf32>
    %141 = arith.truncf %140 : vector<8x64xf32> to vector<8x64xbf16>
    %c0_50 = arith.constant 0 : index
    %c0_51 = arith.constant 0 : index
    %142 = vector.load %arg10[%c0_50, %c0_51] : memref<64x128xf32, #tpu.memory_space<vmem>>, vector<64x128xf32>
    %143 = arith.truncf %142 : vector<64x128xf32> to vector<64x128xbf16>
    %cst_52 = arith.constant dense<0.000000e+00> : vector<8x128xf32>
    %144 = tpu.matmul %141, %143, %cst_52 {dimension_numbers = #tpu.dot_dimension_numbers<[1], [0], [0], [1], [0, 0, 1, 1], [], []>} : vector<8x64xbf16>, vector<64x128xbf16>, vector<8x128xf32> -> vector<8x128xf32>
    %145 = vector.extract_strided_slice %144 {offsets = [0, 0], sizes = [8, 32], strides = [1, 1]} : vector<8x128xf32> to vector<8x32xf32>
    %146 = vector.extract_strided_slice %144 {offsets = [0, 32], sizes = [8, 32], strides = [1, 1]} : vector<8x128xf32> to vector<8x32xf32>
    %147 = arith.negf %145 : vector<8x32xf32>
    %148 = math.exp %147 : vector<8x32xf32>
    %cst_53 = arith.constant 1.000000e+00 : f32
    %149 = vector.broadcast %cst_53 : f32 to vector<8x32xf32>
    %150 = arith.addf %149, %148 : vector<8x32xf32>
    %151 = arith.divf %149, %150 : vector<8x32xf32>
    %152 = arith.mulf %145, %151 : vector<8x32xf32>
    %153 = arith.mulf %152, %146 : vector<8x32xf32>
    %154 = arith.truncf %153 : vector<8x32xf32> to vector<8x32xbf16>
    %c0_54 = arith.constant 0 : index
    %c0_55 = arith.constant 0 : index
    %155 = vector.load %arg11[%c0_54, %c0_55] : memref<32x64xf32, #tpu.memory_space<vmem>>, vector<32x64xf32>
    %156 = arith.truncf %155 : vector<32x64xf32> to vector<32x64xbf16>
    %cst_56 = arith.constant dense<0.000000e+00> : vector<8x64xf32>
    %157 = tpu.matmul %154, %156, %cst_56 {dimension_numbers = #tpu.dot_dimension_numbers<[1], [0], [0], [1], [0, 0, 1, 1], [], []>} : vector<8x32xbf16>, vector<32x64xbf16>, vector<8x64xf32> -> vector<8x64xf32>
    %158 = vector.extract_strided_slice %144 {offsets = [0, 72], sizes = [8, 1], strides = [1, 1]} : vector<8x128xf32> to vector<8x1xf32>
    %159 = arith.negf %158 : vector<8x1xf32>
    %160 = math.exp %159 : vector<8x1xf32>
    %cst_57 = arith.constant 1.000000e+00 : f32
    %161 = vector.broadcast %cst_57 : f32 to vector<8x1xf32>
    %162 = arith.addf %161, %160 : vector<8x1xf32>
    %163 = arith.divf %161, %162 : vector<8x1xf32>
    %164 = vector.broadcast %163 : vector<8x1xf32> to vector<8x64xf32>
    %165 = arith.mulf %164, %157 : vector<8x64xf32>
    %166 = vector.extract_strided_slice %144 {offsets = [0, 64], sizes = [8, 4], strides = [1, 1]} : vector<8x128xf32> to vector<8x4xf32>
    %cst_58 = arith.constant dense<0xFF800000> : vector<8xf32>
    %167 = vector.multi_reduction <maximumf>, %166, %cst_58 [1] : vector<8x4xf32> to vector<8xf32>
    %168 = vector.shape_cast %167 : vector<8xf32> to vector<8x1xf32>
    %169 = vector.broadcast %168 : vector<8x1xf32> to vector<8x4xf32>
    %170 = arith.subf %166, %169 : vector<8x4xf32>
    %171 = math.exp %170 : vector<8x4xf32>
    %cst_59 = arith.constant dense<0.000000e+00> : vector<8xf32>
    %172 = vector.multi_reduction <add>, %171, %cst_59 [1] : vector<8x4xf32> to vector<8xf32>
    %173 = vector.shape_cast %172 : vector<8xf32> to vector<8x1xf32>
    %174 = tpu.reciprocal %173 {approx = true} : vector<8x1xf32> -> vector<8x1xf32>
    %175 = vector.broadcast %174 : vector<8x1xf32> to vector<8x4xf32>
    %176 = arith.mulf %171, %175 : vector<8x4xf32>
    %177 = tpu.iota {dimensions = array<i32: 1>} : vector<8x4xi32>
    %cst_60 = arith.constant dense<0xFF800000> : vector<8xf32>
    %178 = vector.multi_reduction <maximumf>, %176, %cst_60 [1] : vector<8x4xf32> to vector<8xf32>
    %179 = vector.shape_cast %178 : vector<8xf32> to vector<8x1xf32>
    %180 = vector.broadcast %179 : vector<8x1xf32> to vector<8x4xf32>
    %181 = arith.cmpf oeq, %176, %180 : vector<8x4xf32>
    %c4_i32 = arith.constant 4 : i32
    %182 = vector.broadcast %c4_i32 : i32 to vector<8x4xi32>
    %183 = arith.select %181, %177, %182 : vector<8x4xi1>, vector<8x4xi32>
    %cst_61 = arith.constant dense<2147483647> : vector<8xi32>
    %184 = vector.multi_reduction <minsi>, %183, %cst_61 [1] : vector<8x4xi32> to vector<8xi32>
    %185 = vector.shape_cast %184 : vector<8xi32> to vector<8x1xi32>
    %186 = vector.broadcast %185 : vector<8x1xi32> to vector<8x4xi32>
    %187 = arith.cmpi eq, %177, %186 : vector<8x4xi32>
    %cst_62 = arith.constant -1.000000e+00 : f32
    %188 = vector.broadcast %cst_62 : f32 to vector<8x4xf32>
    %189 = arith.select %187, %188, %176 : vector<8x4xi1>, vector<8x4xf32>
    %cst_63 = arith.constant dense<0xFF800000> : vector<8xf32>
    %190 = vector.multi_reduction <maximumf>, %189, %cst_63 [1] : vector<8x4xf32> to vector<8xf32>
    %191 = vector.shape_cast %190 : vector<8xf32> to vector<8x1xf32>
    %192 = vector.broadcast %191 : vector<8x1xf32> to vector<8x4xf32>
    %193 = arith.cmpf oeq, %189, %192 : vector<8x4xf32>
    %c4_i32_64 = arith.constant 4 : i32
    %194 = vector.broadcast %c4_i32_64 : i32 to vector<8x4xi32>
    %195 = arith.select %193, %177, %194 : vector<8x4xi1>, vector<8x4xi32>
    %cst_65 = arith.constant dense<2147483647> : vector<8xi32>
    %196 = vector.multi_reduction <minsi>, %195, %cst_65 [1] : vector<8x4xi32> to vector<8xi32>
    %197 = vector.shape_cast %196 : vector<8xi32> to vector<8x1xi32>
    %198 = vector.broadcast %197 : vector<8x1xi32> to vector<8x4xi32>
    %199 = arith.cmpi eq, %177, %198 : vector<8x4xi32>
    %200 = arith.ori %187, %199 : vector<8x4xi1>
    %cst_66 = arith.constant 0.000000e+00 : f32
    %201 = vector.broadcast %cst_66 : f32 to vector<8x4xf32>
    %202 = arith.select %200, %176, %201 : vector<8x4xi1>, vector<8x4xf32>
    %cst_67 = arith.constant dense<0.000000e+00> : vector<8xf32>
    %203 = vector.multi_reduction <add>, %202, %cst_67 [1] : vector<8x4xf32> to vector<8xf32>
    %204 = vector.shape_cast %203 : vector<8xf32> to vector<8x1xf32>
    %205 = tpu.reciprocal %204 {approx = true} : vector<8x1xf32> -> vector<8x1xf32>
    %206 = vector.broadcast %205 : vector<8x1xf32> to vector<8x4xf32>
    %207 = arith.mulf %202, %206 : vector<8x4xf32>
    %c0_68 = arith.constant 0 : index
    %c0_69 = arith.constant 0 : index
    %c0_70 = arith.constant 0 : index
    %208 = vector.load %arg12[%c0_68, %c0_69, %c0_70] : memref<4x64x64xf32, #tpu.memory_space<vmem>>, vector<1x64x64xf32>
    %209 = vector.shape_cast %208 : vector<1x64x64xf32> to vector<64x64xf32>
    %210 = arith.truncf %209 : vector<64x64xf32> to vector<64x64xbf16>
    %cst_71 = arith.constant dense<0.000000e+00> : vector<8x64xf32>
    %211 = tpu.matmul %141, %210, %cst_71 {dimension_numbers = #tpu.dot_dimension_numbers<[1], [0], [0], [1], [0, 0, 1, 1], [], []>} : vector<8x64xbf16>, vector<64x64xbf16>, vector<8x64xf32> -> vector<8x64xf32>
    %212 = vector.extract_strided_slice %211 {offsets = [0, 0], sizes = [8, 32], strides = [1, 1]} : vector<8x64xf32> to vector<8x32xf32>
    %213 = vector.extract_strided_slice %211 {offsets = [0, 32], sizes = [8, 32], strides = [1, 1]} : vector<8x64xf32> to vector<8x32xf32>
    %214 = arith.negf %212 : vector<8x32xf32>
    %215 = math.exp %214 : vector<8x32xf32>
    %cst_72 = arith.constant 1.000000e+00 : f32
    %216 = vector.broadcast %cst_72 : f32 to vector<8x32xf32>
    %217 = arith.addf %216, %215 : vector<8x32xf32>
    %218 = arith.divf %216, %217 : vector<8x32xf32>
    %219 = arith.mulf %212, %218 : vector<8x32xf32>
    %220 = arith.mulf %219, %213 : vector<8x32xf32>
    %221 = arith.truncf %220 : vector<8x32xf32> to vector<8x32xbf16>
    %c0_73 = arith.constant 0 : index
    %c0_74 = arith.constant 0 : index
    %c0_75 = arith.constant 0 : index
    %222 = vector.load %arg13[%c0_73, %c0_74, %c0_75] : memref<4x32x64xf32, #tpu.memory_space<vmem>>, vector<1x32x64xf32>
    %223 = vector.shape_cast %222 : vector<1x32x64xf32> to vector<32x64xf32>
    %224 = arith.truncf %223 : vector<32x64xf32> to vector<32x64xbf16>
    %cst_76 = arith.constant dense<0.000000e+00> : vector<8x64xf32>
    %225 = tpu.matmul %221, %224, %cst_76 {dimension_numbers = #tpu.dot_dimension_numbers<[1], [0], [0], [1], [0, 0, 1, 1], [], []>} : vector<8x32xbf16>, vector<32x64xbf16>, vector<8x64xf32> -> vector<8x64xf32>
    %226 = vector.extract_strided_slice %207 {offsets = [0, 0], sizes = [8, 1], strides = [1, 1]} : vector<8x4xf32> to vector<8x1xf32>
    %227 = vector.broadcast %226 : vector<8x1xf32> to vector<8x64xf32>
    %228 = arith.mulf %227, %225 : vector<8x64xf32>
    %229 = arith.addf %165, %228 : vector<8x64xf32>
    %c1 = arith.constant 1 : index
    %c0_77 = arith.constant 0 : index
    %c0_78 = arith.constant 0 : index
    %230 = vector.load %arg12[%c1, %c0_77, %c0_78] : memref<4x64x64xf32, #tpu.memory_space<vmem>>, vector<1x64x64xf32>
    %231 = vector.shape_cast %230 : vector<1x64x64xf32> to vector<64x64xf32>
    %232 = arith.truncf %231 : vector<64x64xf32> to vector<64x64xbf16>
    %cst_79 = arith.constant dense<0.000000e+00> : vector<8x64xf32>
    %233 = tpu.matmul %141, %232, %cst_79 {dimension_numbers = #tpu.dot_dimension_numbers<[1], [0], [0], [1], [0, 0, 1, 1], [], []>} : vector<8x64xbf16>, vector<64x64xbf16>, vector<8x64xf32> -> vector<8x64xf32>
    %234 = vector.extract_strided_slice %233 {offsets = [0, 0], sizes = [8, 32], strides = [1, 1]} : vector<8x64xf32> to vector<8x32xf32>
    %235 = vector.extract_strided_slice %233 {offsets = [0, 32], sizes = [8, 32], strides = [1, 1]} : vector<8x64xf32> to vector<8x32xf32>
    %236 = arith.negf %234 : vector<8x32xf32>
    %237 = math.exp %236 : vector<8x32xf32>
    %cst_80 = arith.constant 1.000000e+00 : f32
    %238 = vector.broadcast %cst_80 : f32 to vector<8x32xf32>
    %239 = arith.addf %238, %237 : vector<8x32xf32>
    %240 = arith.divf %238, %239 : vector<8x32xf32>
    %241 = arith.mulf %234, %240 : vector<8x32xf32>
    %242 = arith.mulf %241, %235 : vector<8x32xf32>
    %243 = arith.truncf %242 : vector<8x32xf32> to vector<8x32xbf16>
    %c1_81 = arith.constant 1 : index
    %c0_82 = arith.constant 0 : index
    %c0_83 = arith.constant 0 : index
    %244 = vector.load %arg13[%c1_81, %c0_82, %c0_83] : memref<4x32x64xf32, #tpu.memory_space<vmem>>, vector<1x32x64xf32>
    %245 = vector.shape_cast %244 : vector<1x32x64xf32> to vector<32x64xf32>
    %246 = arith.truncf %245 : vector<32x64xf32> to vector<32x64xbf16>
    %cst_84 = arith.constant dense<0.000000e+00> : vector<8x64xf32>
    %247 = tpu.matmul %243, %246, %cst_84 {dimension_numbers = #tpu.dot_dimension_numbers<[1], [0], [0], [1], [0, 0, 1, 1], [], []>} : vector<8x32xbf16>, vector<32x64xbf16>, vector<8x64xf32> -> vector<8x64xf32>
    %248 = vector.extract_strided_slice %207 {offsets = [0, 1], sizes = [8, 1], strides = [1, 1]} : vector<8x4xf32> to vector<8x1xf32>
    %249 = vector.broadcast %248 : vector<8x1xf32> to vector<8x64xf32>
    %250 = arith.mulf %249, %247 : vector<8x64xf32>
    %251 = arith.addf %229, %250 : vector<8x64xf32>
    %c2 = arith.constant 2 : index
    %c0_85 = arith.constant 0 : index
    %c0_86 = arith.constant 0 : index
    %252 = vector.load %arg12[%c2, %c0_85, %c0_86] : memref<4x64x64xf32, #tpu.memory_space<vmem>>, vector<1x64x64xf32>
    %253 = vector.shape_cast %252 : vector<1x64x64xf32> to vector<64x64xf32>
    %254 = arith.truncf %253 : vector<64x64xf32> to vector<64x64xbf16>
    %cst_87 = arith.constant dense<0.000000e+00> : vector<8x64xf32>
    %255 = tpu.matmul %141, %254, %cst_87 {dimension_numbers = #tpu.dot_dimension_numbers<[1], [0], [0], [1], [0, 0, 1, 1], [], []>} : vector<8x64xbf16>, vector<64x64xbf16>, vector<8x64xf32> -> vector<8x64xf32>
    %256 = vector.extract_strided_slice %255 {offsets = [0, 0], sizes = [8, 32], strides = [1, 1]} : vector<8x64xf32> to vector<8x32xf32>
    %257 = vector.extract_strided_slice %255 {offsets = [0, 32], sizes = [8, 32], strides = [1, 1]} : vector<8x64xf32> to vector<8x32xf32>
    %258 = arith.negf %256 : vector<8x32xf32>
    %259 = math.exp %258 : vector<8x32xf32>
    %cst_88 = arith.constant 1.000000e+00 : f32
    %260 = vector.broadcast %cst_88 : f32 to vector<8x32xf32>
    %261 = arith.addf %260, %259 : vector<8x32xf32>
    %262 = arith.divf %260, %261 : vector<8x32xf32>
    %263 = arith.mulf %256, %262 : vector<8x32xf32>
    %264 = arith.mulf %263, %257 : vector<8x32xf32>
    %265 = arith.truncf %264 : vector<8x32xf32> to vector<8x32xbf16>
    %c2_89 = arith.constant 2 : index
    %c0_90 = arith.constant 0 : index
    %c0_91 = arith.constant 0 : index
    %266 = vector.load %arg13[%c2_89, %c0_90, %c0_91] : memref<4x32x64xf32, #tpu.memory_space<vmem>>, vector<1x32x64xf32>
    %267 = vector.shape_cast %266 : vector<1x32x64xf32> to vector<32x64xf32>
    %268 = arith.truncf %267 : vector<32x64xf32> to vector<32x64xbf16>
    %cst_92 = arith.constant dense<0.000000e+00> : vector<8x64xf32>
    %269 = tpu.matmul %265, %268, %cst_92 {dimension_numbers = #tpu.dot_dimension_numbers<[1], [0], [0], [1], [0, 0, 1, 1], [], []>} : vector<8x32xbf16>, vector<32x64xbf16>, vector<8x64xf32> -> vector<8x64xf32>
    %270 = vector.extract_strided_slice %207 {offsets = [0, 2], sizes = [8, 1], strides = [1, 1]} : vector<8x4xf32> to vector<8x1xf32>
    %271 = vector.broadcast %270 : vector<8x1xf32> to vector<8x64xf32>
    %272 = arith.mulf %271, %269 : vector<8x64xf32>
    %273 = arith.addf %251, %272 : vector<8x64xf32>
    %c3 = arith.constant 3 : index
    %c0_93 = arith.constant 0 : index
    %c0_94 = arith.constant 0 : index
    %274 = vector.load %arg12[%c3, %c0_93, %c0_94] : memref<4x64x64xf32, #tpu.memory_space<vmem>>, vector<1x64x64xf32>
    %275 = vector.shape_cast %274 : vector<1x64x64xf32> to vector<64x64xf32>
    %276 = arith.truncf %275 : vector<64x64xf32> to vector<64x64xbf16>
    %cst_95 = arith.constant dense<0.000000e+00> : vector<8x64xf32>
    %277 = tpu.matmul %141, %276, %cst_95 {dimension_numbers = #tpu.dot_dimension_numbers<[1], [0], [0], [1], [0, 0, 1, 1], [], []>} : vector<8x64xbf16>, vector<64x64xbf16>, vector<8x64xf32> -> vector<8x64xf32>
    %278 = vector.extract_strided_slice %277 {offsets = [0, 0], sizes = [8, 32], strides = [1, 1]} : vector<8x64xf32> to vector<8x32xf32>
    %279 = vector.extract_strided_slice %277 {offsets = [0, 32], sizes = [8, 32], strides = [1, 1]} : vector<8x64xf32> to vector<8x32xf32>
    %280 = arith.negf %278 : vector<8x32xf32>
    %281 = math.exp %280 : vector<8x32xf32>
    %cst_96 = arith.constant 1.000000e+00 : f32
    %282 = vector.broadcast %cst_96 : f32 to vector<8x32xf32>
    %283 = arith.addf %282, %281 : vector<8x32xf32>
    %284 = arith.divf %282, %283 : vector<8x32xf32>
    %285 = arith.mulf %278, %284 : vector<8x32xf32>
    %286 = arith.mulf %285, %279 : vector<8x32xf32>
    %287 = arith.truncf %286 : vector<8x32xf32> to vector<8x32xbf16>
    %c3_97 = arith.constant 3 : index
    %c0_98 = arith.constant 0 : index
    %c0_99 = arith.constant 0 : index
    %288 = vector.load %arg13[%c3_97, %c0_98, %c0_99] : memref<4x32x64xf32, #tpu.memory_space<vmem>>, vector<1x32x64xf32>
    %289 = vector.shape_cast %288 : vector<1x32x64xf32> to vector<32x64xf32>
    %290 = arith.truncf %289 : vector<32x64xf32> to vector<32x64xbf16>
    %cst_100 = arith.constant dense<0.000000e+00> : vector<8x64xf32>
    %291 = tpu.matmul %287, %290, %cst_100 {dimension_numbers = #tpu.dot_dimension_numbers<[1], [0], [0], [1], [0, 0, 1, 1], [], []>} : vector<8x32xbf16>, vector<32x64xbf16>, vector<8x64xf32> -> vector<8x64xf32>
    %292 = vector.extract_strided_slice %207 {offsets = [0, 3], sizes = [8, 1], strides = [1, 1]} : vector<8x4xf32> to vector<8x1xf32>
    %293 = vector.broadcast %292 : vector<8x1xf32> to vector<8x64xf32>
    %294 = arith.mulf %293, %291 : vector<8x64xf32>
    %295 = arith.addf %273, %294 : vector<8x64xf32>
    %296 = tpu.concatenate %295, %127 in 1 : vector<8x64xf32>, vector<8x64xf32> -> vector<8x128xf32>
    %c0_101 = arith.constant 0 : index
    %c0_102 = arith.constant 0 : index
    %297 = vector.load %arg14[%c0_101, %c0_102] : memref<8x128xf32, #tpu.memory_space<vmem>>, vector<8x128xf32>
    tpu.vector_store %arg14[%c0_101, %c0_102], %296 {strides = array<i32>} : memref<8x128xf32, #tpu.memory_space<vmem>>, vector<8x128xf32>,
    return
  }
}

</mosaic_0001>

<bundles_post_ra>
// kernel: tile.34
= control target key start
LH: loop header
LB: loop body
LE: loop exit
PB: predicated region body
PF: predicated region fallthrough
CT: control target
= control target key end

     0   :  { %vm42_vm0 = vcmask 1047556   ;;  %vm44_vm1 = vcmask 130048   ;;  %vm54_vm2 = vcmask 261248   ;;  %s111_s0 = inlined_call_operand.vmem [shape: f32[8,2,16], index: 0, kind: input, shape index: {}]   ;;  %s112_s1 = inlined_call_operand.vmem [shape: f32[8,32], index: 1, kind: output, shape index: {}]  }
   0x1   :  { %v62_v0 = vld [vmem:[%s111_s0 + $0xe] sm:$0x3]  ;;  %v63_v1 = vld [vmem:[%s111_s0 + $0xc] sm:$0x3]  ;;  %v64_v2 = vld [vmem:[%s111_s0 + $0xa] sm:$0x3] }
   0x2   :  { %8 = vst [vmem:[#allocation0 + $0x38] sm:$0x3] %v62_v0  ;;  %13 = vst [vmem:[#allocation0 + $0x30] sm:$0x3] %v63_v1  ;;  %v65_v3 = vld [vmem:[%s111_s0 + $0x8] sm:$0x3] }
   0x3   :  { %18 = vst [vmem:[#allocation0 + $0x28] sm:$0x3] %v64_v2  ;;  %v66_v4 = vld [vmem:[%s111_s0 + $0x6] sm:$0x3]  ;;  %v67_v5 = vld [vmem:[%s111_s0 + $0x4] sm:$0x3] }
   0x4   :  { %23 = vst [vmem:[#allocation0 + $0x20] sm:$0x3] %v65_v3  ;;  %28 = vst [vmem:[#allocation0 + $0x18] sm:$0x3] %v66_v4  ;;  %v68_v6 = vld [vmem:[%s111_s0 + $0x2] sm:$0x3] }
   0x5   :  { %33 = vst [vmem:[#allocation0 + $0x10] sm:$0x3] %v67_v5  ;;  %v38_v7 = vld [vmem:[%s111_s0] sm:$0x3]  ;;  %37 = vst [vmem:[#allocation0 + $0x8] sm:$0x3] %v68_v6 }
   0x6   :  { %39 = vst [vmem:[#allocation0] sm:$0x3] %v38_v7  ;;  %s70_s0 = smov 16  }
   0xb   :  { %v41_v8 = vld [vmem:[#allocation0] ss:$8 sm:$0xf0]   ;;  %v49_v9 = vld [vmem:[#allocation0 + $0x1] ss:$8 sm:$0xf0]  }
   0xd   :  { %v40_v10 = vld [vmem:[#allocation0] ss:$8 sm:$0xf]   ;;  %v47_v11 = vld [vmem:[#allocation0 + $0x1] ss:$8 sm:$0xf]  }
   0xe   :  { %v43_v12 = vsel %vm42_vm0, %v41_v8, %v40_v10  ;;  %v51_v13 = vsel %vm42_vm0, %v49_v9, %v47_v11 }
   0xf   :  { %52 = vrot.lane.b32.xlu0 %v51_v13, %s70_s0  ;;  %45 = vst.msk [vmem:[%s112_s1] sm:$0xff] %vm44_vm1, %v43_v12  }
  0x81   :  { %v53_v14 = vpop.permute.xlu0 %52  }
  0x82   :  { %55 = vst.msk [vmem:[%s112_s1] sm:$0xff] %vm54_vm2, %v53_v14  }

// kernel: tile.29
= control target key start
LH: loop header
LB: loop body
LE: loop exit
PB: predicated region body
PF: predicated region fallthrough
CT: control target
= control target key end

     0   :  { %vm42_vm0 = vcmask 1047556   ;;  %vm44_vm1 = vcmask 130048   ;;  %s93_s22 = smov 16   ;;  %s94_s25 = smov 32   ;;  %vm54_vm2 = vcmask 523648   ;;  %vm64_vm3 = vcmask 392448   ;;  %s146_s0 = inlined_call_operand.vmem [shape: f32[8,4,16], index: 0, kind: input, shape index: {}]   ;;  %s147_s1 = inlined_call_operand.vmem [shape: f32[8,64], index: 1, kind: output, shape index: {}]  }
   0x1   :  { %v82_v0 = vld [vmem:[%s146_s0 + $0x1c] sm:$0xf]  ;;  %v83_v1 = vld [vmem:[%s146_s0 + $0x18] sm:$0xf]  ;;  %v84_v2 = vld [vmem:[%s146_s0 + $0x14] sm:$0xf] }
   0x2   :  { %8 = vst [vmem:[#allocation0 + $0x38] sm:$0xf] %v82_v0  ;;  %13 = vst [vmem:[#allocation0 + $0x30] sm:$0xf] %v83_v1  ;;  %v85_v3 = vld [vmem:[%s146_s0 + $0x10] sm:$0xf] }
   0x3   :  { %18 = vst [vmem:[#allocation0 + $0x28] sm:$0xf] %v84_v2  ;;  %v86_v4 = vld [vmem:[%s146_s0 + $0xc] sm:$0xf]  ;;  %v87_v5 = vld [vmem:[%s146_s0 + $0x8] sm:$0xf] }
   0x4   :  { %23 = vst [vmem:[#allocation0 + $0x20] sm:$0xf] %v85_v3  ;;  %28 = vst [vmem:[#allocation0 + $0x18] sm:$0xf] %v86_v4  ;;  %v88_v6 = vld [vmem:[%s146_s0 + $0x4] sm:$0xf] }
   0x5   :  { %33 = vst [vmem:[#allocation0 + $0x10] sm:$0xf] %v87_v5  ;;  %v38_v7 = vld [vmem:[%s146_s0] sm:$0xf]  ;;  %37 = vst [vmem:[#allocation0 + $0x8] sm:$0xf] %v88_v6 }
   0x6   :  { %39 = vst [vmem:[#allocation0] sm:$0xf] %v38_v7  ;;  %s92_s0 = smov 48   ;;  %vm74_vm4 = vcmask 261248  }
   0xb   :  { %v49_v8 = vld [vmem:[#allocation0 + $0x3] ss:$8 sm:$0xf0]   ;;  %v59_v9 = vld [vmem:[#allocation0 + $0x2] ss:$8 sm:$0xf0]  }
   0xc   :  { %v69_v14 = vld [vmem:[#allocation0 + $0x1] ss:$8 sm:$0xf0]   ;;  %v41_v17 = vld [vmem:[#allocation0] ss:$8 sm:$0xf0]  }
   0xd   :  { %v47_v10 = vld [vmem:[#allocation0 + $0x3] ss:$8 sm:$0xf]   ;;  %v57_v11 = vld [vmem:[#allocation0 + $0x2] ss:$8 sm:$0xf]  }
   0xe   :  { %v51_v12 = vsel %vm42_vm0, %v49_v8, %v47_v10  ;;  %v67_v13 = vld [vmem:[#allocation0 + $0x1] ss:$8 sm:$0xf]   ;;  %v40_v16 = vld [vmem:[#allocation0] ss:$8 sm:$0xf]   ;;  %v61_v18 = vsel %vm42_vm0, %v59_v9, %v57_v11 }
   0xf   :  { %52 = vrot.lane.b32.xlu0 %v51_v12, %s92_s0  ;;  %v71_v15 = vsel %vm42_vm0, %v69_v14, %v67_v13  ;;  %v43_v19 = vsel %vm42_vm0, %v41_v17, %v40_v16 }
  0x10   :  { %72 = vrot.lane.b32.xlu1 %v71_v15, %s93_s22  ;;  %45 = vst.msk [vmem:[%s147_s1] sm:$0xff] %vm44_vm1, %v43_v19  }
  0x13   :  { %62 = vrot.lane.b32.xlu0 %v61_v18, %s94_s25 }
  0x81   :  { %v53_v20 = vpop.permute.xlu0 %52  }
  0x82   :  { %55 = vst.msk [vmem:[%s147_s1] sm:$0xff] %vm54_vm2, %v53_v20   ;;  %v73_v21 = vpop.permute.xlu1 %72  }
  0x85   :  { %v63_v22 = vpop.permute.xlu0 %62  }
  0x86   :  { %65 = vst.msk [vmem:[%s147_s1] sm:$0xff] %vm64_vm3, %v63_v22  }
  0x87   :  { %75 = vst.msk [vmem:[%s147_s1] sm:$0xff] %vm74_vm4, %v73_v21  }

// kernel: _layer_first.1
= control target key start
LH: loop header
LB: loop body
LE: loop exit
PB: predicated region body
PF: predicated region fallthrough
CT: control target
= control target key end

     0   :  { %19 = vsyncpa [#allocation3], 0  ;;  %s2370_s0 = inlined_call_operand.vmem [shape: f32[8,64], index: 0, kind: input, shape index: {}]   ;;  %s2371_s1 = inlined_call_operand.vmem [shape: f32[8,64], index: 1, kind: input, shape index: {}]   ;;  %s2372_s2 = inlined_call_operand.vmem [shape: f32[8,64], index: 2, kind: input, shape index: {}]   ;;  %s2373_s3 = inlined_call_operand.vmem [shape: f32[8,32], index: 3, kind: input, shape index: {}]   ;;  %s2374_s4 = inlined_call_operand.vmem [shape: f32[8,32], index: 4, kind: input, shape index: {}]   ;;  %s2375_s5 = inlined_call_operand.vmem [shape: f32[1,64], index: 5, kind: input, shape index: {}]   ;;  %s2376_s6 = inlined_call_operand.vmem [shape: f32[1,64], index: 6, kind: input, shape index: {}]   ;;  %s2377_s7 = inlined_call_operand.hbm [shape: f32[64,256], index: 7, kind: input, shape index: {}]   ;;  %s2378_s8 = inlined_call_operand.vmem [shape: f32[1,256], index: 8, kind: input, shape index: {}]   ;;  %s2379_s9 = inlined_call_operand.vmem [shape: f32[64,64], index: 9, kind: input, shape index: {}]   ;;  %s2380_s10 = inlined_call_operand.hbm [shape: f32[64,128], index: 10, kind: input, shape index: {}]   ;;  %s2381_s11 = inlined_call_operand.vmem [shape: f32[32,64], index: 11, kind: input, shape index: {}]   ;;  %s2382_s12 = inlined_call_operand.vmem [shape: f32[4,64,64], index: 12, kind: input, shape index: {}]   ;;  %s2383_s13 = inlined_call_operand.hbm [shape: f32[4,32,64], index: 13, kind: input, shape index: {}]   ;;  %s2384_s14 = inlined_call_operand.vmem [shape: f32[8,128], index: 14, kind: output, shape index: {}]  }
   0x1   :  { %20 = vsyncpa [#allocation5], 0  ;;  %s1846_s29 = smov [#allocation4]   ;;  %s1776_s17 = scalar_lea.hbm %s2380_s10, 1024 }
   0x2   :  { %s56_s30 = sshll.u32 %s1846_s29, 4  ;;  %p1777_p0 = scmp.ne.s32.totalorder %s2380_s10, %s1776_s17  ;;  %s57_s30 = int_to_ptr.vmem [resolvable:$true] %s56_s30 }
   0x3   :  { %p1780_p1 = scmp.lt.u32.totalorder %s1776_s17, %s2380_s10 }
   0x5   :  { %p1782_p2 = pnand %p1780_p1, %p1777_p0 }
   0x7   :  { %1785 = shalt.err (!%p1782_p2)
}
   0x8   :  { %s1786_s22 = scalar_lea.vmem %s57_s30, 1024  ;;  %p1791_p4 = scmp.lt.s32.totalorder %s57_s30, %s57_s30 }
   0x9   :  { %p1787_p3 = scmp.ne.s32.totalorder %s57_s30, %s1786_s22  ;;  %p1792_p5 = scmp.lt.s32.totalorder %s1786_s22, %s1786_s22 }
   0xb   :  { %p1793_p6 = por %p1792_p5, %p1791_p4 }
   0xd   :  { %p1794_p7 = pnand %p1793_p6, %p1787_p3 }
   0xf   :  { %1797 = shalt.err (!%p1794_p7)
}
  0x10   :  { %s1847_s23 = smov 128   ;;  %s1848_s24 = smov 8  }
  0x11   :  { %62 = dma.hbm_to_vmem [thread:$0]  %s2380_s10, 1024, %s57_s30, [#allocation5], %s1847_s23, %s1847_s23, %s1848_s24  }
  0x12   :  { %s1849_s27 = smov [#allocation2]   ;;  %s1798_s16 = scalar_lea.hbm %s2377_s7, 2048 }
  0x13   :  { %s40_s28 = sshll.u32 %s1849_s27, 4  ;;  %p1799_p8 = scmp.ne.s32.totalorder %s2377_s7, %s1798_s16  ;;  %s41_s28 = int_to_ptr.vmem [resolvable:$true] %s40_s28 }
  0x14   :  { %p1802_p9 = scmp.lt.u32.totalorder %s1798_s16, %s2377_s7 }
  0x16   :  { %p1804_p10 = pnand %p1802_p9, %p1799_p8 }
  0x18   :  { %1807 = shalt.err (!%p1804_p10)
}
  0x19   :  { %s1808_s21 = scalar_lea.vmem %s41_s28, 2048  ;;  %p1813_p12 = scmp.lt.s32.totalorder %s41_s28, %s41_s28 }
  0x1a   :  { %p1809_p11 = scmp.ne.s32.totalorder %s41_s28, %s1808_s21  ;;  %p1814_p13 = scmp.lt.s32.totalorder %s1808_s21, %s1808_s21 }
  0x1c   :  { %p1815_p0 = por %p1814_p13, %p1813_p12 }
  0x1e   :  { %p1816_p1 = pnand %p1815_p0, %p1809_p11 }
  0x20   :  { %1819 = shalt.err (!%p1816_p1)
}
  0x21   :  { %s1850_s10 = smov 256   ;;  %s1851_s30 = smov 16  }
  0x22   :  { %46 = dma.hbm_to_vmem [thread:$0]  %s2377_s7, 2048, %s41_s28, [#allocation3], %s1850_s10, %s1850_s10, %s1851_s30  }
  0x23   :  { %s1852_s26 = smov [#allocation6]   ;;  %s1820_s16 = scalar_lea.hbm %s2383_s13, 2048 }
  0x24   :  { %s72_s27 = sshll.u32 %s1852_s26, 4  ;;  %p1821_p2 = scmp.ne.s32.totalorder %s2383_s13, %s1820_s16  ;;  %s73_s27 = int_to_ptr.vmem [resolvable:$true] %s72_s27 }
  0x25   :  { %p1824_p3 = scmp.lt.u32.totalorder %s1820_s16, %s2383_s13 }
  0x27   :  { %p1826_p4 = pnand %p1824_p3, %p1821_p2 }
  0x29   :  { %1829 = shalt.err (!%p1826_p4)
}
  0x2a   :  { %s1830_s21 = scalar_lea.vmem %s73_s27, 2048  ;;  %p1835_p6 = scmp.lt.s32.totalorder %s73_s27, %s73_s27 }
  0x2b   :  { %p1831_p5 = scmp.ne.s32.totalorder %s73_s27, %s1830_s21  ;;  %p1836_p7 = scmp.lt.s32.totalorder %s1830_s21, %s1830_s21 }
  0x2d   :  { %p1837_p8 = por %p1836_p7, %p1835_p6 }
  0x2f   :  { %p1838_p9 = pnand %p1837_p8, %p1831_p5 }
  0x31   :  { %1841 = shalt.err (!%p1838_p9)
}
  0x32   :  { %78 = dma.hbm_to_vmem [thread:$0]  %s2383_s13, 2048, %s73_s27, [#allocation5], %s1847_s23, %s1847_s23, %s1848_s24  }
  0x33   :  { %1842 = dma.done.wait [#allocation3], 2048  }
  0x34   :  { %1843 = vsyncadd [#allocation3], 4294965248 }
  0x35   :  { %1844 = dma.done.wait [#allocation5], 3072  }
  0x36   :  { %1845 = vsyncadd [#allocation5], 4294964224  ;;  %v1987_v0 = vld [vmem:[%s2370_s0] sm:$0xff]  ;;  %vm91_vm0 = vcmask 523264   ;;  %v110_v3 = vld [vmem:[#allocation2 + $0x8] sm:$0xff]  ;;  %v1853_v16 = vmov 0   ;;  %v135_v38 = vlaneseq }
  0x37   :  { %v90_v1 = vmul.f32 %v1987_v0, %v1987_v0  ;;  %v112_v4 = vld [vmem:[#allocation2 + $0x18] sm:$0xff]  ;;  %v109_v6 = vld [vmem:[#allocation2] sm:$0xff]  ;;  %v111_v7 = vld [vmem:[#allocation2 + $0x10] sm:$0xff]  ;;  %180 = vmatprep.mubr.bf16.mxu0 %v1853_v16  ;;  %s1854_s25 = smov 64   ;;  %v1855_v44 = vmov 0.0   ;;  %vm1856_vm1 = vmmov 0  }
  0x38   :  { %v126_v5 = vpack.c.bf16 %v112_v4, %v110_v3  ;;  %v125_v8 = vpack.c.bf16 %v111_v7, %v109_v6  ;;  %v114_v9 = vld [vmem:[#allocation2 + $0x28] sm:$0xff]  ;;  %v116_v10 = vld [vmem:[#allocation2 + $0x38] sm:$0xff]  ;;  %v113_v11 = vld [vmem:[#allocation2 + $0x20] sm:$0xff]  ;;  %v2007_v39 = vshrl.u32 %v135_v38, 7  ;;  %1544 = vmatprep.subr.bf16.mxu1 %v1855_v44  ;;  %1546 = vmatprep.mubr.msk.bf16.mxu1 %vm1856_vm1, %v1855_v44  ;;  %s1859_s16 = smov 96   ;;  %s1860_s17 = smov 80  }
  0x39   :  { %v92_v2 = vsel %vm91_vm0, %v90_v1, 0.0  ;;  %v128_v12 = vpack.c.bf16 %v116_v10, %v114_v9  ;;  %v115_v13 = vld [vmem:[#allocation2 + $0x30] sm:$0xff]  ;;  %v118_v14 = vld [vmem:[#allocation2 + $0x48] sm:$0xff]  ;;  %v120_v15 = vld [vmem:[#allocation2 + $0x58] sm:$0xff]  ;;  %vm218_vm2 = vcmask 130048   ;;  %vm267_vm4 = vcmask 64512  }
  0x3a   :  { %93 = vadd.xlane.f32.xlu0 %v92_v2  ;;  %148 = vmatprep.subr.bf16.mxu0 %v126_v5  ;;  %v127_v17 = vpack.c.bf16 %v115_v13, %v113_v11  ;;  %v130_v18 = vpack.c.bf16 %v120_v15, %v118_v14  ;;  %v117_v19 = vld [vmem:[#allocation2 + $0x40] sm:$0xff]  ;;  %v119_v20 = vld [vmem:[#allocation2 + $0x50] sm:$0xff]  ;;  %v122_v21 = vld [vmem:[#allocation2 + $0x68] sm:$0xff]  ;;  %v137_v40 = vsub.s32 0, %v2007_v39  ;;  %v141_v42 = vsub.s32 1, %v2007_v39  ;;  %s1861_s18 = smov 32  }
  0x3b   :  { %149 = vmatpush1.bf16.msra.mxu0 %v125_v8  ;;  %v124_v22 = vld [vmem:[#allocation2 + $0x78] sm:$0xff]  ;;  %v129_v23 = vpack.c.bf16 %v119_v20, %v117_v19  ;;  %v121_v25 = vld [vmem:[#allocation2 + $0x60] sm:$0xff]  ;;  %v123_v26 = vld [vmem:[#allocation2 + $0x70] sm:$0xff]  ;;  %v2052_v8 = vand.u32 127, %v135_v38  ;;  %vm286_vm5 = vcmask 1043456   ;;  %vm660_vm6 = vcmask 261120  }
  0x3c   :  { %150 = vmatprep.subr.bf16.mxu0 %v128_v12  ;;  %v132_v24 = vpack.c.bf16 %v124_v22, %v122_v21  ;;  %v131_v27 = vpack.c.bf16 %v123_v26, %v121_v25  ;;  %v195_v28 = vld [vmem:[%s2373_s3] sm:$0xff]  ;;  %vm662_vm7 = vcmask 392192   ;;  %vm860_vm8 = vcmask 556544  }
  0x3d   :  { %v201_v29 = vld [vmem:[%s2374_s4] sm:$0xff]  ;;  %vm214_vm3 = vcmp.le.s32.totalorder %v2052_v8, %v2007_v39  ;;  %vm871_vm9 = vcmask 31744  }
  0x3e   :  { %203 = vrot.lane.b32.xlu1 %v201_v29, %s1854_s25  ;;  %v1432_v34 = vld [vmem:[%s2375_s5] ss:$0 sm:$0xff] }
  0x3f   :  { %151 = vmatpush1.bf16.msra.mxu0 %v127_v17  ;;  %v133_v41 = vld [vmem:[%s2378_s8] sm:$0x3] }
  0x40   :  { %152 = vmatprep.subr.bf16.mxu0 %v130_v18  ;;  %v138_v43 = vrot.slane %v133_v41, %v137_v40  ;;  %v142_v45 = vrot.slane %v133_v41, %v141_v42  ;;  %v189_v47 = vld [vmem:[%s2371_s1] sm:$0xff]  ;;  %s1857_s1 = smov 112  }
  0x41   :  { %v191_v51 = vld [vmem:[%s2372_s2] sm:$0xff]  ;;  %s1858_s2 = smov 48  }
  0x43   :  { %153 = vmatpush1.bf16.msra.mxu0 %v129_v23 }
  0x44   :  { %154 = vmatprep.subr.bf16.mxu0 %v132_v24 }
  0x47   :  { %155 = vmatpush1.bf16.msra.mxu0 %v131_v27 }
  0x48   :  { %1556 = vmatprep.subr.bf16.mxu0 %v1855_v44 }
  0x50   :  { %197 = vrot.lane.b32.xlu0 %v195_v28, %s1854_s25 }
  0xb0   :  { %v204_v52 = vpop.permute.xlu1 %203 }
  0xc7   :  { %v94_v30 = vpop.xlane.xlu0 %93 }
  0xc8   :  { %v96_v31 = vmul.f32 0.015625, %v94_v30 }
  0xca   :  { %v97_v32 = vadd.f32 1e-06, %v96_v31 }
  0xcb   :  { %v198_v48 = vpop.permute.xlu0 %197 }
  0xcc   :  { %1730 = vrsqrt.f32 %v97_v32 }
  0xd6   :  { %v1731_v33 = vpop.eup %1730 }
  0xd7   :  { %v99_v35 = vmul.f32 %v1731_v33, %v1987_v0 }
  0xd9   :  { %v107_v36 = vmul.f32 %v1432_v34, %v99_v35 }
  0xdb   :  { %v108_v37 = vpack.c.bf16 %v107_v36, %v107_v36 }
  0xdd   :  { %1433 = vmatmul.mubr.msk.bf16.vlgmr.msra.gmra.mrb[0].mxu0 %vm91_vm0, %v108_v37 }
  0xde   :  { %1558 = vmatprep.mubr.msk.bf16.mxu0 %vm1856_vm1, %v1855_v44 }
 0x1b0   :  { %v182_v46 = vpop.f32.mrb[0].mxu0 }
 0x1b1   :  { %v2019_v49 = vadd.f32 %v182_v46, %v138_v43  ;;  %v184_v50 = vpop.f32.mrb[1].mxu0 }
 0x1b2   :  { %v185_v53 = vadd.f32 %v184_v50, %v142_v45  ;;  %v186_v54 = vpop.f32.mrb[2].mxu0 }
 0x1b3   :  { %v190_v55 = vmul.f32 %v189_v47, %v2019_v49  ;;  %v200_v56 = vmul.f32 %v198_v48, %v2019_v49  ;;  %v187_v57 = vpop.f32.mrb[3].mxu0 }
 0x1b4   :  { %v192_v58 = vmul.f32 %v191_v51, %v185_v53  ;;  %v206_v59 = vmul.f32 %v204_v52, %v185_v53 }
 0x1b6   :  { %v193_v60 = vadd.f32 %v192_v58, %v190_v55  ;;  %v207_v61 = vadd.f32 %v206_v59, %v200_v56 }
 0x1b8   :  { %v208_v62 = vpack.c.bf16 %v207_v61, %v207_v61  ;;  %v194_v63 = vpack.c.bf16 %v193_v60, %v193_v60  ;;  %v209_v60 = vpack.c.bf16 %v2019_v49, %v2019_v49 }
 0x1ba   :  { %216 = vrot.lane.b32.xlu1 %v208_v62, %s1854_s25 }
 0x1be   :  { %331 = vrot.lane.b32.xlu1 %v194_v63, %s1857_s1 }
 0x1c2   :  { %435 = vrot.lane.b32.xlu1 %v208_v62, %s1858_s2 }
 0x1c6   :  { %433 = vrot.lane.b32.xlu1 %v194_v63, %s1859_s16 }
 0x1ca   :  { %545 = vrot.lane.b32.xlu1 %v194_v63, %s1860_s17 }
 0x22c   :  { %v217_v1 = vpop.permute.xlu1 %216 }
 0x22d   :  { %v223_v2 = vsel %vm218_vm2, %v217_v1, 0 }
 0x22e   :  { %1545 = vmatpush3.bf16.xpose.msra.mxu1 %v223_v2  ;;  %1557 = vmatpush3.bf16.xpose.msra.mxu0 %v223_v2 }
 0x22f   :  { %1568 = vmatprep.subr.bf16.mxu0 %v1855_v44  ;;  %1550 = vmatprep.subr.bf16.mxu1 %v1855_v44 }
 0x230   :  { %v332_v3 = vpop.permute.xlu1 %331 }
 0x234   :  { %v436_v4 = vpop.permute.xlu1 %435 }
 0x235   :  { %v441_v5 = vsel %vm218_vm2, %v436_v4, 0  ;;  %1547 = vmatmul.mubr.msk.bf16.vlgmr.msra.gmra.mrb[0].mxu1 %vm218_vm2, %v194_v63  ;;  %1559 = vmatmul.mubr.msk.bf16.vlgmr.msra.gmra.mrb[4].mxu0 %vm218_vm2, %v332_v3 }
 0x236   :  { %1569 = vmatpush3.bf16.xpose.msra.mxu0 %v441_v5  ;;  %1570 = vmatprep.mubr.msk.bf16.mxu0 %vm1856_vm1, %v1855_v44 }
 0x237   :  { %1580 = vmatprep.subr.bf16.mxu0 %v1855_v44  ;;  %1552 = vmatprep.mubr.msk.bf16.mxu1 %vm1856_vm1, %v1855_v44 }
 0x238   :  { %v434_v6 = vpop.permute.xlu1 %433 }
 0x23c   :  { %v546_v7 = vpop.permute.xlu1 %545 }
 0x23d   :  { %1571 = vmatmul.mubr.msk.bf16.vlgmr.msra.gmra.mrb[8].mxu0 %vm218_vm2, %v434_v6 }
 0x23e   :  { %1581 = vmatpush3.bf16.xpose.msra.mxu0 %v441_v5  ;;  %1582 = vmatprep.mubr.msk.bf16.mxu0 %vm1856_vm1, %v1855_v44 }
 0x23f   :  { %1592 = vmatprep.subr.bf16.mxu0 %v1855_v44 }
 0x245   :  { %1583 = vmatmul.mubr.msk.bf16.vlgmr.msra.gmra.mrb[12].mxu0 %vm218_vm2, %v546_v7 }
 0x246   :  { %1600 = vmatprep.mubr.msk.bf16.mxu0 %vm1856_vm1, %v1855_v44 }
 0x308   :  { %v259_v9 = vpop.f32.mrb[0].mxu1  ;;  %v370_v10 = vpop.f32.mrb[4].mxu0 }
 0x309   :  { %v265_v11 = vmul.f32 0.25, %v259_v9  ;;  %v376_v12 = vmul.f32 0.25, %v370_v10  ;;  %v1548_v13 = vpop.f32.mrb[1].mxu1  ;;  %v1560_v14 = vpop.f32.mrb[5].mxu0 }
 0x30a   :  { %v262_v15 = vpop.f32.mrb[2].mxu1  ;;  %v373_v17 = vpop.f32.mrb[6].mxu0 }
 0x30b   :  { %v1549_v18 = vpop.f32.mrb[3].mxu1  ;;  %v1561_v19 = vpop.f32.mrb[7].mxu0  ;;  %v266_v20 = vsel %vm214_vm3, %v265_v11, -1e+30  ;;  %v377_v21 = vsel %vm214_vm3, %v376_v12, -1e+30 }
 0x30c   :  { %v268_v22 = vsel %vm267_vm4, %v266_v20, -inf  ;;  %v378_v23 = vsel %vm267_vm4, %v377_v21, -inf  ;;  %v665_v19 = vld [vmem:[%s2379_s9] sm:$0xff] }
 0x30d   :  { %269 = vmax.xlane.f32.xlu1 %v268_v22  ;;  %379 = vmax.xlane.f32.xlu0 %v378_v23 }
 0x310   :  { %v477_v24 = vpop.f32.mrb[8].mxu0 }
 0x311   :  { %v483_v25 = vmul.f32 0.25, %v477_v24  ;;  %v1572_v26 = vpop.f32.mrb[9].mxu0 }
 0x312   :  { %v480_v27 = vpop.f32.mrb[10].mxu0  ;;  %v668_v26 = vld [vmem:[%s2379_s9 + $0x18] sm:$0xff] }
 0x313   :  { %v1573_v28 = vpop.f32.mrb[11].mxu0  ;;  %v484_v29 = vsel %vm214_vm3, %v483_v25, -1e+30  ;;  %v667_v25 = vld [vmem:[%s2379_s9 + $0x10] sm:$0xff] }
 0x314   :  { %v485_v30 = vsel %vm267_vm4, %v484_v29, -inf  ;;  %v674_v28 = vpack.c.bf16 %v668_v26, %v667_v25  ;;  %v937_v26 = vld [vmem:[%s2382_s12 + $0x20] sm:$0xff] }
 0x315   :  { %486 = vmax.xlane.f32.xlu0 %v485_v30  ;;  %v670_v30 = vld [vmem:[%s2379_s9 + $0x28] sm:$0xff] }
 0x318   :  { %v584_v31 = vpop.f32.mrb[12].mxu0 }
 0x319   :  { %v590_v32 = vmul.f32 0.25, %v584_v31  ;;  %v1584_v33 = vpop.f32.mrb[13].mxu0 }
 0x31a   :  { %v587_v34 = vpop.f32.mrb[14].mxu0 }
 0x31b   :  { %v1585_v35 = vpop.f32.mrb[15].mxu0  ;;  %v591_v36 = vsel %vm214_vm3, %v590_v32, -1e+30 }
 0x31c   :  { %v592_v37 = vsel %vm267_vm4, %v591_v36, -inf  ;;  %v671_v35 = vld [vmem:[%s2379_s9 + $0x30] sm:$0xff] }
 0x31d   :  { %593 = vmax.xlane.f32.xlu1 %v592_v37 }
 0x39a   :  { %v380_v38 = vpop.xlane.xlu0 %379  ;;  %v270_v40 = vpop.xlane.xlu1 %269 }
 0x39b   :  { %v381_v41 = vsub.f32 %v377_v21, %v380_v38  ;;  %v271_v42 = vsub.f32 %v266_v20, %v270_v40  ;;  %v666_v20 = vld [vmem:[%s2379_s9 + $0x8] sm:$0xff] }
 0x39c   :  { %v673_v21 = vpack.c.bf16 %v666_v20, %v665_v19  ;;  %v934_v19 = vld [vmem:[%s2382_s12 + $0x8] sm:$0xff] }
 0x39d   :  { %v382_v43 = vmul.f32 1.442695, %v381_v41  ;;  %v272_v45 = vmul.f32 1.442695, %v271_v42 }
 0x39e   :  { %1593 = vmatpush3.bf16.msra.mxu0 %v673_v21 }
 0x39f   :  { %1732 = vpow2.f32 %v382_v43  ;;  %1594 = vmatprep.subr.bf16.mxu0 %v1855_v44 }
 0x3a0   :  { %1734 = vpow2.f32 %v272_v45 }
 0x3a2   :  { %v487_v46 = vpop.xlane.xlu0 %486  ;;  %1595 = vmatpush3.bf16.msra.mxu0 %v674_v28 }
 0x3a3   :  { %v488_v47 = vsub.f32 %v484_v29, %v487_v46  ;;  %v669_v29 = vld [vmem:[%s2379_s9 + $0x20] sm:$0xff]  ;;  %1596 = vmatprep.subr.bf16.mxu0 %v1855_v44 }
 0x3a4   :  { %v675_v31 = vpack.c.bf16 %v670_v30, %v669_v29  ;;  %v939_v29 = vld [vmem:[%s2382_s12 + $0x30] sm:$0xff]  ;;  %v940_v30 = vld [vmem:[%s2382_s12 + $0x38] sm:$0xff] }
 0x3a5   :  { %v489_v48 = vmul.f32 1.442695, %v488_v47 }
 0x3a6   :  { %1597 = vmatpush3.bf16.msra.mxu0 %v675_v31  ;;  %v944_v31 = vpack.c.bf16 %v940_v30, %v939_v29 }
 0x3a7   :  { %1736 = vpow2.f32 %v489_v48  ;;  %1598 = vmatprep.subr.bf16.mxu0 %v1855_v44 }
 0x3a9   :  { %v1733_v50 = vpop.eup %1732 }
 0x3aa   :  { %v1735_v51 = vpop.eup %1734  ;;  %v594_v52 = vpop.xlane.xlu1 %593  ;;  %v384_v39 = vsel %vm267_vm4, %v1733_v50, 0.0 }
 0x3ab   :  { %v595_v53 = vsub.f32 %v591_v36, %v594_v52  ;;  %385 = vadd.xlane.f32.xlu1 %v384_v39  ;;  %v274_v54 = vsel %vm267_vm4, %v1735_v51, 0.0  ;;  %v672_v36 = vld [vmem:[%s2379_s9 + $0x38] sm:$0xff] }
 0x3ac   :  { %275 = vadd.xlane.f32.xlu0 %v274_v54  ;;  %v676_v38 = vpack.c.bf16 %v672_v36, %v671_v35  ;;  %v807_v35 = vld [vmem:[%s2381_s11 + $0x10] sm:$0xff]  ;;  %v808_v36 = vld [vmem:[%s2381_s11 + $0x18] sm:$0xff] }
 0x3ad   :  { %v596_v55 = vmul.f32 1.442695, %v595_v53 }
 0x3ae   :  { %1599 = vmatpush3.bf16.msra.mxu0 %v676_v38 }
 0x3af   :  { %1738 = vpow2.f32 %v596_v55  ;;  %1616 = vmatprep.subr.bf16.mxu0 %v1855_v44 }
 0x3b1   :  { %v1737_v56 = vpop.eup %1736 }
 0x3b2   :  { %v491_v57 = vsel %vm267_vm4, %v1737_v56, 0.0 }
 0x3b3   :  { %492 = vadd.xlane.f32.xlu0 %v491_v57 }
 0x3b9   :  { %v1739_v58 = vpop.eup %1738 }
 0x3ba   :  { %v598_v59 = vsel %vm267_vm4, %v1739_v58, 0.0 }
 0x3bb   :  { %599 = vadd.xlane.f32.xlu1 %v598_v59 }
 0x3c9   :  { %281 = vrot.lane.b32.xlu0 %v209_v60, %s1861_s18 }
 0x3cc   :  { %497 = vrot.lane.b32.xlu1 %v209_v60, %s1851_s30 }
 0x438   :  { %v386_v62 = vpop.xlane.xlu1 %385 }
 0x439   :  { %v276_v61 = vpop.xlane.xlu0 %275 }
 0x43a   :  { %1740 = vrcp.f32 %v276_v61 }
 0x43b   :  { %1742 = vrcp.f32 %v386_v62 }
 0x440   :  { %v493_v63 = vpop.xlane.xlu0 %492 }
 0x441   :  { %1744 = vrcp.f32 %v493_v63  ;;  %v737_v63 = vld [vmem:[#allocation4] sm:$0xff] }
 0x444   :  { %v1741_v1 = vpop.eup %1740  ;;  %v282_v2 = vpop.permute.xlu0 %281 }
 0x445   :  { %v278_v3 = vmul.f32 %v1741_v1, %v1735_v51  ;;  %v288_v4 = vsel %vm286_vm5, %v282_v2, 0  ;;  %v1743_v49 = vpop.eup %1742  ;;  %v738_v1 = vld [vmem:[#allocation4 + $0x8] sm:$0xff] }
 0x446   :  { %1551 = vmatpush3.bf16.msra.mxu1 %v288_v4  ;;  %v388_v7 = vmul.f32 %v1743_v49, %v1733_v50  ;;  %v745_v2 = vpack.c.bf16 %v738_v1, %v737_v63  ;;  %v742_v49 = vld [vmem:[#allocation4 + $0x28] sm:$0xff]  ;;  %v1000_v1 = vld [vmem:[#allocation6 + $0x10] sm:$0xff] }
 0x447   :  { %v279_v5 = vpack.c.bf16 %v278_v3, %v278_v3  ;;  %1562 = vmatprep.subr.bf16.mxu1 %v1855_v44  ;;  %v739_v3 = vld [vmem:[#allocation4 + $0x10] sm:$0xff] }
 0x448   :  { %v600_v6 = vpop.xlane.xlu1 %599  ;;  %v389_v10 = vpack.c.bf16 %v388_v7, %v388_v7  ;;  %v743_v7 = vld [vmem:[#allocation4 + $0x30] sm:$0xff] }
 0x449   :  { %1553 = vmatmul.mubr.msk.bf16.vlgmr.msra.gmra.mrb[4].mxu1 %vm267_vm4, %v279_v5  ;;  %1746 = vrcp.f32 %v600_v6 }
 0x44a   :  { %1563 = vmatpush3.bf16.msra.mxu1 %v288_v4  ;;  %1564 = vmatprep.mubr.msk.bf16.mxu1 %vm1856_vm1, %v1855_v44  ;;  %v740_v4 = vld [vmem:[#allocation4 + $0x18] sm:$0xff] }
 0x44b   :  { %1574 = vmatprep.subr.bf16.mxu1 %v1855_v44  ;;  %v1745_v11 = vpop.eup %1744  ;;  %v746_v5 = vpack.c.bf16 %v740_v4, %v739_v3 }
 0x44c   :  { %v498_v9 = vpop.permute.xlu1 %497  ;;  %v495_v13 = vmul.f32 %v1745_v11, %v1737_v56 }
 0x44d   :  { %v503_v12 = vsel %vm286_vm5, %v498_v9, 0  ;;  %v744_v9 = vld [vmem:[#allocation4 + $0x38] sm:$0xff] }
 0x44e   :  { %v496_v14 = vpack.c.bf16 %v495_v13, %v495_v13 }
 0x451   :  { %1565 = vmatmul.mubr.msk.bf16.vlgmr.msra.gmra.mrb[8].mxu1 %vm267_vm4, %v389_v10  ;;  %v748_v10 = vpack.c.bf16 %v744_v9, %v743_v7 }
 0x452   :  { %1575 = vmatpush3.bf16.msra.mxu1 %v503_v12  ;;  %1576 = vmatprep.mubr.msk.bf16.mxu1 %vm1856_vm1, %v1855_v44 }
 0x453   :  { %1586 = vmatprep.subr.bf16.mxu1 %v1855_v44  ;;  %v1747_v15 = vpop.eup %1746 }
 0x454   :  { %v602_v17 = vmul.f32 %v1747_v15, %v1739_v58  ;;  %v1443_v15 = vld [vmem:[%s2376_s6] ss:$0 sm:$0xff] }
 0x456   :  { %v603_v18 = vpack.c.bf16 %v602_v17, %v602_v17 }
 0x459   :  { %1577 = vmatmul.mubr.msk.bf16.vlgmr.msra.gmra.mrb[12].mxu1 %vm267_vm4, %v496_v14 }
 0x45a   :  { %1587 = vmatpush3.bf16.msra.mxu1 %v503_v12  ;;  %1588 = vmatprep.mubr.msk.bf16.mxu1 %vm1856_vm1, %v1855_v44 }
 0x45b   :  { %1604 = vmatprep.subr.bf16.mxu1 %v1855_v44 }
 0x461   :  { %1589 = vmatmul.mubr.msk.bf16.vlgmr.msra.gmra.mrb[16].mxu1 %vm267_vm4, %v603_v18  ;;  %v933_v18 = vld [vmem:[%s2382_s12] sm:$0xff] }
 0x462   :  { %1612 = vmatprep.mubr.msk.bf16.mxu1 %vm1856_vm1, %v1855_v44  ;;  %1605 = vmatpush3.bf16.msra.mxu1 %v745_v2  ;;  %v941_v21 = vpack.c.bf16 %v934_v19, %v933_v18  ;;  %v1001_v2 = vld [vmem:[#allocation6 + $0x18] sm:$0xff]  ;;  %v1456_v18 = vld [vmem:[%s2382_s12 + $0x70] sm:$0xff] }
 0x463   :  { %1606 = vmatprep.subr.bf16.mxu1 %v1855_v44  ;;  %v1003_v3 = vpack.c.bf16 %v1001_v2, %v1000_v1  ;;  %v1457_v19 = vld [vmem:[%s2382_s12 + $0x78] sm:$0xff]  ;;  %v1465_v1 = vld [vmem:[%s2382_s12 + $0xa0] sm:$0xff]  ;;  %v1466_v2 = vld [vmem:[%s2382_s12 + $0xa8] sm:$0xff] }
 0x466   :  { %1607 = vmatpush3.bf16.msra.mxu1 %v746_v5 }
 0x467   :  { %1608 = vmatprep.subr.bf16.mxu1 %v1855_v44 }
 0x51c   :  { %v324_v22 = vpop.f32.mrb[4].mxu1 }
 0x51d   :  { %v1554_v23 = vpop.f32.mrb[5].mxu1 }
 0x51e   :  { %v327_v24 = vpop.f32.mrb[6].mxu1  ;;  %v935_v23 = vld [vmem:[%s2382_s12 + $0x10] sm:$0xff] }
 0x51f   :  { %v1555_v27 = vpop.f32.mrb[7].mxu1  ;;  %v936_v24 = vld [vmem:[%s2382_s12 + $0x18] sm:$0xff] }
 0x520   :  { %v942_v25 = vpack.c.bf16 %v936_v24, %v935_v23  ;;  %v938_v27 = vld [vmem:[%s2382_s12 + $0x28] sm:$0xff] }
 0x521   :  { %v943_v28 = vpack.c.bf16 %v938_v27, %v937_v26  ;;  %v1121_v26 = vld [vmem:[#allocation6 + $0x20] sm:$0xff]  ;;  %v1122_v27 = vld [vmem:[#allocation6 + $0x28] sm:$0xff] }
 0x524   :  { %v427_v32 = vpop.f32.mrb[8].mxu1 }
 0x525   :  { %648 = vrot.lane.b32.xlu1 %v427_v32, %s1851_s30  ;;  %v1566_v33 = vpop.f32.mrb[9].mxu1  ;;  %v805_v32 = vld [vmem:[%s2381_s11] sm:$0xff] }
 0x526   :  { %v430_v34 = vpop.f32.mrb[10].mxu1  ;;  %v806_v33 = vld [vmem:[%s2381_s11 + $0x8] sm:$0xff] }
 0x527   :  { %v1567_v37 = vpop.f32.mrb[11].mxu1  ;;  %v809_v34 = vpack.c.bf16 %v806_v33, %v805_v32 }
 0x528   :  { %v810_v37 = vpack.c.bf16 %v808_v36, %v807_v35  ;;  %v1123_v35 = vld [vmem:[#allocation6 + $0x30] sm:$0xff]  ;;  %v1124_v36 = vld [vmem:[#allocation6 + $0x38] sm:$0xff] }
 0x52c   :  { %v539_v40 = vpop.f32.mrb[12].mxu1 }
 0x52d   :  { %652 = vrot.lane.b32.xlu0 %v539_v40, %s1861_s18  ;;  %v1578_v41 = vpop.f32.mrb[13].mxu1 }
 0x52e   :  { %v542_v42 = vpop.f32.mrb[14].mxu1 }
 0x52f   :  { %v1579_v43 = vpop.f32.mrb[15].mxu1 }
 0x534   :  { %v641_v45 = vpop.f32.mrb[16].mxu1 }
 0x535   :  { %656 = vrot.lane.b32.xlu1 %v641_v45, %s1858_s2  ;;  %v1590_v46 = vpop.f32.mrb[17].mxu1 }
 0x536   :  { %v644_v47 = vpop.f32.mrb[18].mxu1 }
 0x537   :  { %v1591_v48 = vpop.f32.mrb[19].mxu1 }
 0x597   :  { %v649_v50 = vpop.permute.xlu1 %648 }
 0x598   :  { %v659_v52 = vsel %vm218_vm2, %v324_v22, %v649_v50 }
 0x59f   :  { %v653_v51 = vpop.permute.xlu0 %652 }
 0x5a0   :  { %v661_v39 = vsel %vm660_vm6, %v659_v52, %v653_v51 }
 0x5a7   :  { %v657_v53 = vpop.permute.xlu1 %656 }
 0x5a8   :  { %v663_v54 = vsel %vm662_vm7, %v661_v39, %v657_v53 }
 0x5a9   :  { %v664_v55 = vpack.c.bf16 %v663_v54, %v663_v54 }
 0x5ab   :  { %1601 = vmatmul.mubr.msk.bf16.vlgmr.msra.gmra.mrb[16].mxu0 %vm91_vm0, %v664_v55 }
 0x5ac   :  { %1620 = vmatprep.mubr.msk.bf16.mxu0 %vm1856_vm1, %v1855_v44  ;;  %1617 = vmatpush3.bf16.msra.mxu0 %v809_v34 }
 0x5ad   :  { %1618 = vmatprep.subr.bf16.mxu0 %v1855_v44 }
 0x5b0   :  { %1619 = vmatpush3.bf16.msra.mxu0 %v810_v37 }
 0x5b1   :  { %1636 = vmatprep.subr.bf16.mxu0 %v1855_v44 }
 0x67e   :  { %v714_v56 = vpop.f32.mrb[16].mxu0 }
 0x67f   :  { %v2135_v57 = vadd.f32 %v714_v56, %v1987_v0  ;;  %v1602_v58 = vpop.f32.mrb[17].mxu0  ;;  %v741_v0 = vld [vmem:[#allocation4 + $0x20] sm:$0xff] }
 0x680   :  { %v717_v59 = vpop.f32.mrb[18].mxu0  ;;  %v747_v6 = vpack.c.bf16 %v742_v49, %v741_v0  ;;  %v998_v58 = vld [vmem:[#allocation6] sm:$0xff]  ;;  %v1451_v49 = vld [vmem:[%s2382_s12 + $0x48] sm:$0xff] }
 0x681   :  { %v1603_v60 = vpop.f32.mrb[19].mxu0  ;;  %v720_v61 = vmul.f32 %v2135_v57, %v2135_v57  ;;  %v999_v59 = vld [vmem:[#allocation6 + $0x8] sm:$0xff]  ;;  %v1450_v0 = vld [vmem:[%s2382_s12 + $0x40] sm:$0xff] }
 0x682   :  { %1609 = vmatpush3.bf16.msra.mxu1 %v747_v6  ;;  %v1063_v9 = vpack.c.bf16 %v1451_v49, %v1450_v0 }
 0x683   :  { %v721_v62 = vsel %vm91_vm0, %v720_v61, 0.0  ;;  %1610 = vmatprep.subr.bf16.mxu1 %v1855_v44 }
 0x684   :  { %722 = vadd.xlane.f32.xlu0 %v721_v62  ;;  %v1002_v62 = vpack.c.bf16 %v999_v59, %v998_v58 }
 0x686   :  { %1611 = vmatpush3.bf16.msra.mxu1 %v748_v10 }
 0x687   :  { %1624 = vmatprep.subr.bf16.mxu1 %v1855_v44 }
 0x711   :  { %v723_v11 = vpop.xlane.xlu0 %722 }
 0x712   :  { %v724_v12 = vmul.f32 0.015625, %v723_v11  ;;  %v1452_v11 = vld [vmem:[%s2382_s12 + $0x50] sm:$0xff] }
 0x714   :  { %v725_v13 = vadd.f32 1e-06, %v724_v12  ;;  %v1453_v12 = vld [vmem:[%s2382_s12 + $0x58] sm:$0xff] }
 0x716   :  { %1748 = vrsqrt.f32 %v725_v13  ;;  %v1064_v13 = vpack.c.bf16 %v1453_v12, %v1452_v11  ;;  %v1244_v11 = vld [vmem:[#allocation6 + $0x48] sm:$0xff] }
 0x720   :  { %v1749_v14 = vpop.eup %1748 }
 0x721   :  { %v727_v17 = vmul.f32 %v1749_v14, %v2135_v57  ;;  %v1454_v14 = vld [vmem:[%s2382_s12 + $0x60] sm:$0xff] }
 0x723   :  { %v735_v20 = vmul.f32 %v1443_v15, %v727_v17  ;;  %v1455_v15 = vld [vmem:[%s2382_s12 + $0x68] sm:$0xff] }
 0x724   :  { %v1065_v17 = vpack.c.bf16 %v1455_v15, %v1454_v14 }
 0x725   :  { %v2154_v22 = vpack.c.bf16 %v735_v20, %v735_v20  ;;  %v1066_v20 = vpack.c.bf16 %v1457_v19, %v1456_v18 }
 0x727   :  { %1613 = vmatmul.mubr.msk.bf16.vlgmr.msra.gmra.mrb[20].mxu1 %vm91_vm0, %v2154_v22 }
 0x728   :  { %1625 = vmatpush3.bf16.msra.mxu1 %v941_v21  ;;  %1632 = vmatprep.mubr.msk.bf16.mxu1 %vm1856_vm1, %v1855_v44 }
 0x729   :  { %1626 = vmatprep.subr.bf16.mxu1 %v1855_v44 }
 0x72c   :  { %1627 = vmatpush3.bf16.msra.mxu1 %v942_v25 }
 0x72d   :  { %1628 = vmatprep.subr.bf16.mxu1 %v1855_v44 }
 0x730   :  { %1629 = vmatpush3.bf16.msra.mxu1 %v943_v28  ;;  %v1125_v28 = vpack.c.bf16 %v1122_v27, %v1121_v26 }
 0x731   :  { %1630 = vmatprep.subr.bf16.mxu1 %v1855_v44 }
 0x734   :  { %1631 = vmatpush3.bf16.msra.mxu1 %v944_v31 }
 0x735   :  { %1656 = vmatprep.subr.bf16.mxu1 %v1855_v44 }
 0x737   :  { %1633 = vmatmul.mubr.msk.bf16.vlgmr.msra.gmra.mrb[24].mxu1 %vm91_vm0, %v2154_v22 }
 0x738   :  { %1660 = vmatprep.mubr.msk.bf16.mxu1 %vm1856_vm1, %v1855_v44  ;;  %1657 = vmatpush3.bf16.msra.mxu1 %v1125_v28 }
 0x739   :  { %1658 = vmatprep.subr.bf16.mxu1 %v1855_v44 }
 0x7fa   :  { %v2200_v38 = vpop.f32.mrb[20].mxu1 }
 0x7fb   :  { %800 = vrot.lane.b32.xlu1 %v2200_v38, %s1859_s16  ;;  %v1614_v40 = vpop.f32.mrb[21].mxu1  ;;  %v861_v48 = vsel %vm860_vm8, %v2200_v38, -inf  ;;  %v1445_v50 = vmul.f32 -1.442695, %v2200_v38 }
 0x7fc   :  { %v789_v41 = vpop.f32.mrb[22].mxu1 }
 0x7fd   :  { %v1615_v42 = vpop.f32.mrb[23].mxu1  ;;  %1750 = vpow2.f32 %v1445_v50 }
 0x807   :  { %v1751_v51 = vpop.eup %1750 }
 0x808   :  { %v795_v39 = vadd.f32 1.0, %v1751_v51 }
 0x80a   :  { %v979_v43 = vpop.f32.mrb[24].mxu1 }
 0x80b   :  { %993 = vrot.lane.b32.xlu1 %v979_v43, %s1859_s16  ;;  %v1634_v45 = vpop.f32.mrb[25].mxu1  ;;  %v1448_v52 = vmul.f32 -1.442695, %v979_v43 }
 0x80c   :  { %v982_v46 = vpop.f32.mrb[26].mxu1 }
 0x80d   :  { %v1635_v47 = vpop.f32.mrb[27].mxu1  ;;  %1752 = vpow2.f32 %v1448_v52 }
 0x80e   :  { %1754 = vrcp.f32 %v795_v39 }
 0x817   :  { %v1753_v53 = vpop.eup %1752 }
 0x818   :  { %v2208_v54 = vpop.eup %1754  ;;  %v988_v55 = vadd.f32 1.0, %v1753_v53  ;;  %v1461_v53 = vld [vmem:[%s2382_s12 + $0x80] sm:$0xff] }
 0x819   :  { %v798_v56 = vmul.f32 %v2208_v54, %v2200_v38 }
 0x81a   :  { %1756 = vrcp.f32 %v988_v55  ;;  %v1462_v55 = vld [vmem:[%s2382_s12 + $0x88] sm:$0xff] }
 0x81b   :  { %v1185_v59 = vpack.c.bf16 %v1462_v55, %v1461_v53  ;;  %v1478_v53 = vld [vmem:[%s2382_s12 + $0xf0] sm:$0xff]  ;;  %v1479_v55 = vld [vmem:[%s2382_s12 + $0xf8] sm:$0xff] }
 0x824   :  { %v1757_v4 = vpop.eup %1756 }
 0x825   :  { %v991_v5 = vmul.f32 %v1757_v4, %v979_v43  ;;  %v1467_v4 = vld [vmem:[%s2382_s12 + $0xb0] sm:$0xff] }
 0x82f   :  { %862 = vmax.xlane.f32.xlu1 %v861_v48 }
 0x86d   :  { %v801_v60 = vpop.permute.xlu1 %800 }
 0x86e   :  { %v803_v61 = vmul.f32 %v801_v60, %v798_v56 }
 0x870   :  { %v804_v63 = vpack.c.bf16 %v803_v61, %v803_v61  ;;  %v1463_v61 = vld [vmem:[%s2382_s12 + $0x90] sm:$0xff] }
 0x872   :  { %1621 = vmatmul.mubr.msk.bf16.vlgmr.msra.gmra.mrb[20].mxu0 %vm660_vm6, %v804_v63 }
 0x873   :  { %1637 = vmatpush3.bf16.msra.mxu0 %v1002_v62  ;;  %1640 = vmatprep.mubr.msk.bf16.mxu0 %vm1856_vm1, %v1855_v44  ;;  %v1464_v62 = vld [vmem:[%s2382_s12 + $0x98] sm:$0xff] }
 0x874   :  { %1638 = vmatprep.subr.bf16.mxu0 %v1855_v44  ;;  %v1186_v63 = vpack.c.bf16 %v1464_v62, %v1463_v61 }
 0x877   :  { %1639 = vmatpush3.bf16.msra.mxu0 %v1003_v3  ;;  %v1187_v3 = vpack.c.bf16 %v1466_v2, %v1465_v1 }
 0x878   :  { %1644 = vmatprep.subr.bf16.mxu0 %v1855_v44 }
 0x87d   :  { %v994_v6 = vpop.permute.xlu1 %993 }
 0x87e   :  { %v996_v7 = vmul.f32 %v994_v6, %v991_v5  ;;  %v1468_v5 = vld [vmem:[%s2382_s12 + $0xb8] sm:$0xff] }
 0x87f   :  { %v1188_v0 = vpack.c.bf16 %v1468_v5, %v1467_v4 }
 0x880   :  { %v997_v10 = vpack.c.bf16 %v996_v7, %v996_v7 }
 0x882   :  { %1641 = vmatmul.mubr.msk.bf16.vlgmr.msra.gmra.mrb[24].mxu0 %vm660_vm6, %v997_v10  ;;  %v1243_v10 = vld [vmem:[#allocation6 + $0x40] sm:$0xff] }
 0x883   :  { %1645 = vmatpush3.bf16.msra.mxu0 %v1063_v9  ;;  %1652 = vmatprep.mubr.msk.bf16.mxu0 %vm1856_vm1, %v1855_v44  ;;  %v1247_v12 = vpack.c.bf16 %v1244_v11, %v1243_v10  ;;  %v1367_v11 = vld [vmem:[#allocation6 + $0x70] sm:$0xff] }
 0x884   :  { %1646 = vmatprep.subr.bf16.mxu0 %v1855_v44 }
 0x887   :  { %1647 = vmatpush3.bf16.msra.mxu0 %v1064_v13 }
 0x888   :  { %1648 = vmatprep.subr.bf16.mxu0 %v1855_v44 }
 0x88b   :  { %1649 = vmatpush3.bf16.msra.mxu0 %v1065_v17 }
 0x88c   :  { %1650 = vmatprep.subr.bf16.mxu0 %v1855_v44 }
 0x88f   :  { %1651 = vmatpush3.bf16.msra.mxu0 %v1066_v20  ;;  %v1245_v20 = vld [vmem:[#allocation6 + $0x50] sm:$0xff] }
 0x890   :  { %1676 = vmatprep.subr.bf16.mxu0 %v1855_v44 }
 0x892   :  { %1653 = vmatmul.mubr.msk.bf16.vlgmr.msra.gmra.mrb[28].mxu0 %vm91_vm0, %v2154_v22 }
 0x893   :  { %1680 = vmatprep.mubr.msk.bf16.mxu0 %vm1856_vm1, %v1855_v44  ;;  %1677 = vmatpush3.bf16.msra.mxu0 %v1247_v12  ;;  %v1368_v12 = vld [vmem:[#allocation6 + $0x78] sm:$0xff] }
 0x894   :  { %1678 = vmatprep.subr.bf16.mxu0 %v1855_v44 }
 0x8bc   :  { %v863_v21 = vpop.xlane.xlu1 %862 }
 0x8bd   :  { %v864_v23 = vsub.f32 %v2200_v38, %v863_v21  ;;  %v1126_v38 = vpack.c.bf16 %v1124_v36, %v1123_v35  ;;  %v1246_v21 = vld [vmem:[#allocation6 + $0x58] sm:$0xff] }
 0x8bf   :  { %v865_v24 = vmul.f32 1.442695, %v864_v23  ;;  %1659 = vmatpush3.bf16.msra.mxu1 %v1126_v38 }
 0x8c0   :  { %1664 = vmatprep.subr.bf16.mxu1 %v1855_v44 }
 0x8c1   :  { %1758 = vpow2.f32 %v865_v24 }
 0x8cb   :  { %v2253_v25 = vpop.eup %1758 }
 0x8cc   :  { %868 = vrot.lane.b32.xlu1 %v2253_v25, %s1854_s25 }
 0x93e   :  { %v869_v46 = vpop.permute.xlu1 %868 }
 0x93f   :  { %v872_v47 = vsel %vm871_vm9, %v869_v46, 0.0 }
 0x945   :  { %v2258_v29 = vpop.f32.mrb[20].mxu0 }
 0x946   :  { %v1622_v30 = vpop.f32.mrb[21].mxu0 }
 0x947   :  { %v851_v31 = vpop.f32.mrb[22].mxu0 }
 0x948   :  { %v1623_v32 = vpop.f32.mrb[23].mxu0 }
 0x955   :  { %v2260_v33 = vpop.f32.mrb[24].mxu0 }
 0x956   :  { %v1642_v34 = vpop.f32.mrb[25].mxu0 }
 0x957   :  { %v1044_v37 = vpop.f32.mrb[26].mxu0 }
 0x958   :  { %v1643_v40 = vpop.f32.mrb[27].mxu0 }
 0x959   :  { %v1472_v40 = vld [vmem:[%s2382_s12 + $0xc0] sm:$0xff] }
 0x965   :  { %v1101_v41 = vpop.f32.mrb[28].mxu0 }
 0x966   :  { %1115 = vrot.lane.b32.xlu0 %v1101_v41, %s1859_s16  ;;  %v1654_v42 = vpop.f32.mrb[29].mxu0  ;;  %v1459_v48 = vmul.f32 -1.442695, %v1101_v41 }
 0x967   :  { %v1104_v43 = vpop.f32.mrb[30].mxu0 }
 0x968   :  { %v1655_v45 = vpop.f32.mrb[31].mxu0  ;;  %1760 = vpow2.f32 %v1459_v48  ;;  %v1475_v48 = vld [vmem:[%s2382_s12 + $0xd8] sm:$0xff] }
 0x972   :  { %v1761_v50 = vpop.eup %1760 }
 0x973   :  { %v1110_v51 = vadd.f32 1.0, %v1761_v50 }
 0x975   :  { %1762 = vrcp.f32 %v1110_v51  ;;  %v1476_v51 = vld [vmem:[%s2382_s12 + $0xe0] sm:$0xff] }
 0x97f   :  { %v1763_v52 = vpop.eup %1762 }
 0x980   :  { %v1113_v39 = vmul.f32 %v1763_v52, %v1101_v41  ;;  %v1473_v41 = vld [vmem:[%s2382_s12 + $0xc8] sm:$0xff] }
 0x981   :  { %v1307_v45 = vpack.c.bf16 %v1473_v41, %v1472_v40  ;;  %v1477_v52 = vld [vmem:[%s2382_s12 + $0xe8] sm:$0xff] }
 0x985   :  { %873 = vadd.xlane.f32.xlu0 %v872_v47  ;;  %v1474_v47 = vld [vmem:[%s2382_s12 + $0xd0] sm:$0xff] }
 0x986   :  { %v1308_v50 = vpack.c.bf16 %v1475_v48, %v1474_v47 }
 0x99b   :  { %881 = vrot.lane.b32.xlu0 %v2052_v8, %s1854_s25 }
 0x9d8   :  { %v1116_v56 = vpop.permute.xlu0 %1115 }
 0x9d9   :  { %v1118_v58 = vmul.f32 %v1116_v56, %v1113_v39  ;;  %v1309_v39 = vpack.c.bf16 %v1477_v52, %v1476_v51 }
 0x9db   :  { %v1119_v60 = vpack.c.bf16 %v1118_v58, %v1118_v58  ;;  %v1310_v58 = vpack.c.bf16 %v1479_v55, %v1478_v53 }
 0x9dd   :  { %1661 = vmatmul.mubr.msk.bf16.vlgmr.msra.gmra.mrb[28].mxu1 %vm660_vm6, %v1119_v60 }
 0x9de   :  { %1665 = vmatpush3.bf16.msra.mxu1 %v1185_v59  ;;  %1672 = vmatprep.mubr.msk.bf16.mxu1 %vm1856_vm1, %v1855_v44 }
 0x9df   :  { %1666 = vmatprep.subr.bf16.mxu1 %v1855_v44 }
 0x9e2   :  { %1667 = vmatpush3.bf16.msra.mxu1 %v1186_v63 }
 0x9e3   :  { %1668 = vmatprep.subr.bf16.mxu1 %v1855_v44 }
 0x9e6   :  { %1669 = vmatpush3.bf16.msra.mxu1 %v1187_v3 }
 0x9e7   :  { %1670 = vmatprep.subr.bf16.mxu1 %v1855_v44 }
 0x9ea   :  { %1671 = vmatpush3.bf16.msra.mxu1 %v1188_v0 }
 0x9eb   :  { %1696 = vmatprep.subr.bf16.mxu1 %v1855_v44 }
 0x9ed   :  { %1673 = vmatmul.mubr.msk.bf16.vlgmr.msra.gmra.mrb[32].mxu1 %vm91_vm0, %v2154_v22 }
 0x9ee   :  { %1700 = vmatprep.mubr.msk.bf16.mxu1 %vm1856_vm1, %v1855_v44 }
 0xa12   :  { %v874_v49 = vpop.xlane.xlu0 %873 }
 0xa13   :  { %1764 = vrcp.f32 %v874_v49  ;;  %v1365_v49 = vld [vmem:[#allocation6 + $0x60] sm:$0xff] }
 0xa16   :  { %v882_v13 = vpop.permute.xlu0 %881 }
 0xa1d   :  { %v1765_v6 = vpop.eup %1764 }
 0xa1e   :  { %v876_v7 = vmul.f32 %v1765_v6, %v2253_v25  ;;  %v1248_v25 = vpack.c.bf16 %v1246_v21, %v1245_v20  ;;  %v1366_v6 = vld [vmem:[#allocation6 + $0x68] sm:$0xff] }
 0xa20   :  { %v877_v9 = vsel %vm860_vm8, %v876_v7, -inf  ;;  %1679 = vmatpush3.bf16.msra.mxu0 %v1248_v25 }
 0xa21   :  { %878 = vmax.xlane.f32.xlu1 %v877_v9  ;;  %1684 = vmatprep.subr.bf16.mxu0 %v1855_v44 }
 0xaae   :  { %v879_v14 = vpop.xlane.xlu1 %878 }
 0xaaf   :  { %vm880_vm10 = vcmp.eq.f32.partialorder %v876_v7, %v879_v14  ;;  %v1370_v14 = vpack.c.bf16 %v1368_v12, %v1367_v11 }
 0xab0   :  { %v883_v15 = vsel %vm880_vm10, %v882_v13, 4  ;;  %v2305_v17 = vpop.f32.mrb[28].mxu1 }
 0xab1   :  { %v884_v18 = vsel %vm860_vm8, %v883_v15, 2147483647  ;;  %v1662_v19 = vpop.f32.mrb[29].mxu1 }
 0xab2   :  { %v1167_v23 = vpop.f32.mrb[30].mxu1  ;;  %v886_v24 = vshra.s32 %v884_v18, 16  ;;  %v885_v56 = vand.u32 65535, %v884_v18 }
 0xab3   :  { %v1663_v26 = vpop.f32.mrb[31].mxu1 }
 0xab4   :  { %v888_v27 = vcvt.s32.f32 %v886_v24  ;;  %v887_v60 = vcvt.s32.f32 %v885_v56 }
 0xab6   :  { %889 = vmin.xlane.f32.xlu0 %v888_v27 }
 0xac0   :  { %v1223_v28 = vpop.f32.mrb[32].mxu1 }
 0xac1   :  { %1237 = vrot.lane.b32.xlu1 %v1223_v28, %s1859_s16  ;;  %v1674_v30 = vpop.f32.mrb[33].mxu1  ;;  %v1470_v34 = vmul.f32 -1.442695, %v1223_v28 }
 0xac2   :  { %v1226_v31 = vpop.f32.mrb[34].mxu1  ;;  %v1862_v30 = vmov 72  }
 0xac3   :  { %v1675_v32 = vpop.f32.mrb[35].mxu1  ;;  %1766 = vpow2.f32 %v1470_v34  ;;  %1724 = vset.pattern.permute.xlu1 %v1862_v30 }
 0xacc   :  { %901 = vrot.lane.b32.xlu0 %v876_v7, %s1854_s25  ;;  %v1369_v7 = vpack.c.bf16 %v1366_v6, %v1365_v49 }
 0xacd   :  { %v1767_v35 = vpop.eup %1766 }
 0xace   :  { %v1232_v36 = vadd.f32 1.0, %v1767_v35  ;;  %1697 = vmatpush3.bf16.msra.mxu1 %v1369_v7 }
 0xacf   :  { %1698 = vmatprep.subr.bf16.mxu1 %v1855_v44 }
 0xad0   :  { %1768 = vrcp.f32 %v1232_v36 }
 0xad2   :  { %1699 = vmatpush3.bf16.msra.mxu1 %v1370_v14 }
 0xada   :  { %v1769_v37 = vpop.eup %1768 }
 0xadb   :  { %v1235_v38 = vmul.f32 %v1769_v37, %v1223_v28 }
 0xb33   :  { %v1238_v42 = vpop.permute.xlu1 %1237 }
 0xb34   :  { %v1240_v43 = vmul.f32 %v1238_v42, %v1235_v38 }
 0xb36   :  { %v1241_v46 = vpack.c.bf16 %v1240_v43, %v1240_v43 }
 0xb38   :  { %1681 = vmatmul.mubr.msk.bf16.vlgmr.msra.gmra.mrb[32].mxu0 %vm660_vm6, %v1241_v46 }
 0xb39   :  { %1685 = vmatpush3.bf16.msra.mxu0 %v1307_v45  ;;  %1692 = vmatprep.mubr.msk.bf16.mxu0 %vm1856_vm1, %v1855_v44 }
 0xb3a   :  { %1686 = vmatprep.subr.bf16.mxu0 %v1855_v44 }
 0xb3d   :  { %1687 = vmatpush3.bf16.msra.mxu0 %v1308_v50 }
 0xb3e   :  { %1688 = vmatprep.subr.bf16.mxu0 %v1855_v44 }
 0xb41   :  { %1689 = vmatpush3.bf16.msra.mxu0 %v1309_v39 }
 0xb42   :  { %1690 = vmatprep.subr.bf16.mxu0 %v1855_v44 }
 0xb43   :  { %v890_v59 = vpop.xlane.xlu0 %889 }
 0xb44   :  { %vm891_vm11 = vcmp.eq.f32.partialorder %v888_v27, %v890_v59  ;;  %v896_v62 = vcvt.f32.s32 %v890_v59  ;;  %v1865_v59 = vmov 2  }
 0xb45   :  { %1691 = vmatpush3.bf16.msra.mxu0 %v1310_v58  ;;  %v892_v61 = vsel %vm891_vm11, %v887_v60, inf  ;;  %v1864_v58 = vmov 1  }
 0xb46   :  { %893 = vmin.xlane.f32.xlu1 %v892_v61  ;;  %v897_v1 = vshll.u32 %v896_v62, 16 }
 0xb47   :  { %v902_v4 = vpop.permute.xlu0 %901 }
 0xb48   :  { %1693 = vmatmul.mubr.msk.bf16.vlgmr.msra.gmra.mrb[36].mxu0 %vm91_vm0, %v2154_v22 }
 0xbd3   :  { %v894_v63 = vpop.xlane.xlu1 %893 }
 0xbd4   :  { %v895_v2 = vcvt.f32.s32 %v894_v63 }
 0xbd6   :  { %v898_v3 = vadd.s32 %v897_v1, %v895_v2 }
 0xbd8   :  { %vm899_vm12 = vcmp.eq.s32.totalorder %v2052_v8, %v898_v3 }
 0xbd9   :  { %v904_v5 = vsel %vm899_vm12, -1.0, %v902_v4 }
 0xbda   :  { %v905_v0 = vsel %vm871_vm9, %v904_v5, -inf }
 0xbdb   :  { %906 = vmax.xlane.f32.xlu1 %v905_v0 }
 0xc0b   :  { %v2348_v22 = vpop.f32.mrb[32].mxu0 }
 0xc0c   :  { %v1682_v9 = vpop.f32.mrb[33].mxu0 }
 0xc0d   :  { %v1289_v10 = vpop.f32.mrb[34].mxu0 }
 0xc0e   :  { %v1683_v13 = vpop.f32.mrb[35].mxu0 }
 0xc1b   :  { %v1345_v15 = vpop.f32.mrb[36].mxu0 }
 0xc1c   :  { %1359 = vrot.lane.b32.xlu0 %v1345_v15, %s1859_s16  ;;  %v1694_v18 = vpop.f32.mrb[37].mxu0  ;;  %v1481_v44 = vmul.f32 -1.442695, %v1345_v15 }
 0xc1d   :  { %v1348_v19 = vpop.f32.mrb[38].mxu0 }
 0xc1e   :  { %v1695_v20 = vpop.f32.mrb[39].mxu0  ;;  %1770 = vpow2.f32 %v1481_v44 }
 0xc28   :  { %v1771_v27 = vpop.eup %1770 }
 0xc29   :  { %v1354_v28 = vadd.f32 1.0, %v1771_v27 }
 0xc2b   :  { %1772 = vrcp.f32 %v1354_v28 }
 0xc35   :  { %v1773_v31 = vpop.eup %1772 }
 0xc36   :  { %v1357_v32 = vmul.f32 %v1773_v31, %v1345_v15 }
 0xc68   :  { %v907_v21 = vpop.xlane.xlu1 %906 }
 0xc69   :  { %vm908_vm13 = vcmp.eq.f32.partialorder %v904_v5, %v907_v21 }
 0xc6a   :  { %v909_v23 = vsel %vm908_vm13, %v2052_v8, 4 }
 0xc6b   :  { %v910_v24 = vsel %vm871_vm9, %v909_v23, 2147483647 }
 0xc6c   :  { %v912_v25 = vshra.s32 %v910_v24, 16  ;;  %v911_v37 = vand.u32 65535, %v910_v24 }
 0xc6e   :  { %v914_v26 = vcvt.s32.f32 %v912_v25  ;;  %v913_v40 = vcvt.s32.f32 %v911_v37 }
 0xc70   :  { %915 = vmin.xlane.f32.xlu1 %v914_v26 }
 0xc8e   :  { %v1360_v34 = vpop.permute.xlu0 %1359 }
 0xc8f   :  { %v1362_v35 = vmul.f32 %v1360_v34, %v1357_v32 }
 0xc91   :  { %v1363_v36 = vpack.c.bf16 %v1362_v35, %v1362_v35 }
 0xc93   :  { %1701 = vmatmul.mubr.msk.bf16.vlgmr.msra.gmra.mrb[36].mxu1 %vm660_vm6, %v1363_v36 }
 0xcfd   :  { %v916_v38 = vpop.xlane.xlu1 %915 }
 0xcfe   :  { %vm917_vm14 = vcmp.eq.f32.partialorder %v914_v26, %v916_v38  ;;  %v922_v47 = vcvt.f32.s32 %v916_v38 }
 0xcff   :  { %v918_v41 = vsel %vm917_vm14, %v913_v40, inf }
 0xd00   :  { %919 = vmin.xlane.f32.xlu1 %v918_v41  ;;  %v923_v50 = vshll.u32 %v922_v47, 16 }
 0xd11   :  { %856 = vperm.xlu1 %1724, %v2208_v54  }
 0xd15   :  { %1725 = vset.pattern.permute.xlu1 %v1853_v16  ;;  %v1863_v16 = vmov 3  }
 0xd16   :  { %1729 = vset.pattern.permute.xlu0 %v1863_v16 }
 0xd66   :  { %v1408_v42 = vpop.f32.mrb[36].mxu1 }
 0xd67   :  { %v1702_v43 = vpop.f32.mrb[37].mxu1 }
 0xd68   :  { %v1411_v45 = vpop.f32.mrb[38].mxu1 }
 0xd69   :  { %v1703_v46 = vpop.f32.mrb[39].mxu1 }
 0xd8d   :  { %v920_v48 = vpop.xlane.xlu1 %919 }
 0xd8e   :  { %v921_v51 = vcvt.f32.s32 %v920_v48 }
 0xd90   :  { %v924_v52 = vadd.s32 %v923_v50, %v921_v51 }
 0xd92   :  { %vm925_vm15 = vcmp.eq.s32.totalorder %v2052_v8, %v924_v52  ;;  %v857_v8 = vpop.permute.xlu1 %856 }
 0xd93   :  { %vm926_vm1 = vmor %vm899_vm12, %vm925_vm15  ;;  %v859_v61 = vmul.f32 %v857_v8, %v2258_v29 }
 0xd94   :  { %v927_v39 = vsel %vm926_vm1, %v902_v4, 0.0 }
 0xd95   :  { %v928_v53 = vsel %vm871_vm9, %v927_v39, 0.0 }
 0xd96   :  { %929 = vadd.xlane.f32.xlu0 %v928_v53 }
 0xdac   :  { %1421 = vrot.lane.b32.xlu0 %v2135_v57, %s1854_s25 }
 0xe23   :  { %v930_v54 = vpop.xlane.xlu0 %929 }
 0xe24   :  { %1774 = vrcp.f32 %v930_v54 }
 0xe27   :  { %v1422_v7 = vpop.permute.xlu0 %1421 }
 0xe2e   :  { %v1775_v55 = vpop.eup %1774 }
 0xe2f   :  { %v932_v56 = vmul.f32 %v1775_v55, %v927_v39 }
 0xe31   :  { %1049 = vperm.xlu1 %1725, %v932_v56  }
 0xe35   :  { %1726 = vset.pattern.permute.xlu1 %v1864_v58 }
 0xe36   :  { %1171 = vperm.xlu1 %1726, %v932_v56  }
 0xe3a   :  { %1727 = vset.pattern.permute.xlu1 %v1865_v59 }
 0xe3b   :  { %1293 = vperm.xlu1 %1727, %v932_v56  }
 0xe3f   :  { %1728 = vset.pattern.permute.xlu1 %v1863_v16 }
 0xe40   :  { %1415 = vperm.xlu1 %1728, %v932_v56  }
 0xeb0   :  { %v1050_v60 = vpop.permute.xlu1 %1049 }
 0xeb1   :  { %v1052_v57 = vmul.f32 %v1050_v60, %v2260_v33 }
 0xeb3   :  { %v1053_v62 = vadd.f32 %v1052_v57, %v859_v61 }
 0xeb5   :  { %v1172_v63 = vpop.permute.xlu1 %1171 }
 0xeb6   :  { %v1174_v1 = vmul.f32 %v1172_v63, %v2305_v17 }
 0xeb8   :  { %v1175_v2 = vadd.f32 %v1174_v1, %v1053_v62 }
 0xeba   :  { %v1294_v3 = vpop.permute.xlu1 %1293 }
 0xebb   :  { %v1296_v4 = vmul.f32 %v1294_v3, %v2348_v22 }
 0xebd   :  { %v1297_v5 = vadd.f32 %v1296_v4, %v1175_v2 }
 0xebf   :  { %v1416_v0 = vpop.permute.xlu1 %1415 }
 0xec0   :  { %v1418_v49 = vmul.f32 %v1416_v0, %v1408_v42 }
 0xec2   :  { %v1419_v6 = vadd.f32 %v1418_v49, %v1297_v5 }
 0xec4   :  { %v1424_v9 = vsel %vm91_vm0, %v1419_v6, %v1422_v7 }
 0xec5   :  { %1425 = vst [vmem:[%s2384_s14] sm:$0xff] %v1424_v9 }
 0xec6   :  { %1430 = vsyncpa [#allocation3], 1 }
 0xec7   :  { %1431 = vsyncpa [#allocation5], 1 }

</bundles_post_ra>
